<compile_context>
chip_gen: v7x
topology: tpu7x:2x2x1
jax: 0.10.0
libtpu: 0.0.40
codegen_flags: <defaults>
</compile_context>

<pallas_src>
import math
import functools
from dataclasses import dataclass

import jax
import jax.numpy as jnp
from jax.experimental import pallas as pl
from jax.experimental.pallas import tpu as pltpu  # noqa: F401  (TPU backend)


# --------------------------------------------------------------------------
# Fused prefill kernel:
#   qkv linear + in-place KV-cache write + causal GQA attention + output linear
# --------------------------------------------------------------------------
def _fused_prefill_kernel(x_ref, wa_ref, ba_ref, wp_ref, bp_ref,          # inputs
                          kc_in_ref, vc_in_ref,                           # aliased cache in
                          y_ref, kc_out_ref, vc_out_ref,                  # outputs
                          *, batch, seq, n_head, n_group_head):
    C = x_ref.shape[1]
    hd = C // n_head
    n_kv_head = n_head // n_group_head
    kv_dim = n_kv_head * hd
    mm = wa_ref.dtype                    # bf16 for the MXU
    NEG = jnp.float32(-1e30)             # finite causal fill (no -inf arithmetic)

    # Preserve the untouched tail of the cache (rows >= seq).  The output block
    # aliases the input HBM buffer; copy explicitly so this is correct whether
    # or not the in/out VMEM windows coincide (tiny: a few KiB).
    kc_out_ref[...] = kc_in_ref[...]
    vc_out_ref[...] = vc_in_ref[...]

    # ---- fused qkv projection for ALL batch*seq tokens in one MXU pass ----
    # (1/sqrt(hd) is already folded into the q columns of wa/ba at init)
    qkv = jnp.dot(x_ref[...].astype(mm), wa_ref[...],
                  preferred_element_type=jnp.float32) + ba_ref[...]   # (B*T, C+2kv) f32

    # causal mask, shared by every (batch, head) pair
    row = jax.lax.broadcasted_iota(jnp.int32, (seq, seq), 0)
    col = jax.lax.broadcasted_iota(jnp.int32, (seq, seq), 1)
    causal = col <= row

    qk_dims = (((1,), (1,)), ((), ()))   # q @ k^T: contract the head dim of both

    for b in range(batch):               # batch == 2: fully unrolled, tiny
        qkv_b = qkv[b * seq:(b + 1) * seq, :]            # (T, C+2kv) register slice
        k_b = qkv_b[:, C:C + kv_dim]                     # (T, kv_dim) f32
        v_b = qkv_b[:, C + kv_dim:]                      # (T, kv_dim) f32

        # in-place KV-cache write, module buffer layout (B, Hkv, block, hd)
        for hk in range(n_kv_head):
            kc_out_ref[b, hk, 0:seq, :] = k_b[:, hk * hd:(hk + 1) * hd]
            vc_out_ref[b, hk, 0:seq, :] = v_b[:, hk * hd:(hk + 1) * hd]

        # ---- causal GQA attention + output projection, per head ----------
        acc = jnp.zeros((seq, C), jnp.float32)
        for h in range(n_head):
            hk = h // n_group_head                       # GQA repeat = just an index
            q_h = qkv_b[:, h * hd:(h + 1) * hd].astype(mm)        # (T, hd), pre-scaled
            k_h = k_b[:, hk * hd:(hk + 1) * hd].astype(mm)
            v_h = v_b[:, hk * hd:(hk + 1) * hd].astype(mm)

            s = jax.lax.dot_general(q_h, k_h, qk_dims,
                                    preferred_element_type=jnp.float32)  # (T, T) f32
            s = jnp.where(causal, s, NEG)
            m = jnp.max(s, axis=-1, keepdims=True)
            p = jnp.exp(s - m)
            l = jnp.sum(p, axis=-1, keepdims=True)
            o = jnp.dot(p.astype(mm), v_h,
                        preferred_element_type=jnp.float32)              # (T, hd)
            o = o * pl.reciprocal(l, approx=True)                        # EUP slot

            # output projection: accumulate o_h @ W_proj[h] straight from regs
            acc = acc + jnp.dot(o.astype(mm), wp_ref[h],
                                preferred_element_type=jnp.float32)      # (T, C)

        y_ref[b * seq:(b + 1) * seq, :] = (acc + bp_ref[...]).astype(y_ref.dtype)


@functools.partial(jax.jit, static_argnames=("n_head", "n_group_head"))
def fused_prefill_attention(x, w_attn, b_attn, w_proj, b_proj,
                            k_cache, v_cache, *, n_head, n_group_head):
    """Prefill forward pass.

    x:       (B, T, C) f32
    w_attn:  (C, qkv_dim) bf16, q columns pre-scaled by 1/sqrt(hd)
    b_attn:  (1, qkv_dim) f32,  q entries pre-scaled by 1/sqrt(hd)
    w_proj:  (n_head, hd, C) bf16
    b_proj:  (1, C) f32
    k_cache/v_cache: (B, Hkv, block_size, hd) f32 (module buffer layout)

    Returns (y (B, T, C), new_k_cache, new_v_cache); the caches are updated
    in place inside the kernel via input_output_aliases.
    """
    B, T, C = x.shape
    x2 = x.reshape(B * T, C)     # fold B into sublanes; contiguous -> free reshape

    kern = functools.partial(_fused_prefill_kernel, batch=B, seq=T,
                             n_head=n_head, n_group_head=n_group_head)

    y2, k_new, v_new = pl.pallas_call(
        kern,
        out_shape=(
            jax.ShapeDtypeStruct((B * T, C), x.dtype),
            jax.ShapeDtypeStruct(k_cache.shape, k_cache.dtype),
            jax.ShapeDtypeStruct(v_cache.shape, v_cache.dtype),
        ),
        # single grid step; all (tiny) arrays are resident in VMEM
        input_output_aliases={5: 1, 6: 2},   # k_cache -> out 1, v_cache -> out 2
    )(x2, w_attn, b_attn, w_proj, b_proj, k_cache, v_cache)

    return y2.reshape(B, T, C), k_new, v_new


# --------------------------------------------------------------------------
# Module wrapper (parameter prep at init + Python-side bookkeeping)
# --------------------------------------------------------------------------
@dataclass
class Config:
    n_embd: int = 32
    n_head: int = 4
    n_group_head: int = 2
    block_size: int = 16
    num_return_sequences: int = 2


class KVCacheCausalSelfAttentionPallas:
    def __init__(self, config: Config, key):
        C = config.n_embd
        assert C % config.n_head == 0
        assert config.n_head % config.n_group_head == 0
        assert C % config.n_group_head == 0
        qkv_dim = C + 2 * (C // config.n_group_head)    # integer arithmetic
        hd = C // config.n_head

        k1, k2, k3, k4 = jax.random.split(key, 4)
        bound = 1.0 / math.sqrt(C)   # mimic nn.Linear uniform(-1/sqrt(in), 1/sqrt(in))
        # raw f32 params, stored (in_features, out_features) so the kernel does x @ W
        self.w_attn = jax.random.uniform(k1, (C, qkv_dim), jnp.float32, -bound, bound)
        self.b_attn = jax.random.uniform(k2, (qkv_dim,), jnp.float32, -bound, bound)
        self.w_proj = jax.random.uniform(k3, (C, C), jnp.float32, -bound, bound)
        self.b_proj = jax.random.uniform(k4, (C,), jnp.float32, -bound, bound)

        # kernel-ready parameters, prepared ONCE at init:
        #   * 1/sqrt(hd) folded into the q columns of W_attn and b_attn
        #   * weights cast to bf16 once (no per-call astype / HBM rewrite)
        #   * W_proj pre-reshaped to (n_head, hd, C) for per-head accumulation
        scale = 1.0 / math.sqrt(hd)
        self.w_attn_k = self.w_attn.at[:, :C].multiply(scale).astype(jnp.bfloat16)
        self.b_attn_k = self.b_attn.at[:C].multiply(scale).reshape(1, qkv_dim)
        self.w_proj_k = self.w_proj.reshape(config.n_head, hd, C).astype(jnp.bfloat16)
        self.b_proj_k = self.b_proj.reshape(1, C)

        self.n_head = config.n_head
        self.n_group_head = config.n_group_head
        self.n_kv_head = config.n_head // config.n_group_head
        self.n_embd = C
        self.block_size = config.block_size

        self.k_cache = jnp.zeros(
            (config.num_return_sequences, self.n_kv_head, config.block_size, hd),
            jnp.float32)
        self.v_cache = jnp.zeros_like(self.k_cache)
        # NOTE: Python-side mutable state; wrap in a pure function before jitting
        # the full training/inference step.
        self.next_token_idx = 0

    def __call__(self, x):
        B, T, C = x.shape
        assert T <= self.block_size and B == self.k_cache.shape[0]

        if self.next_token_idx != 0:
            # TODO(synk): decode path (next_token_idx > 0, incl. _shift_cache) is
            # not exercised here; only the prefill branch is implemented.
            raise NotImplementedError("decode path not implemented")

        y, self.k_cache, self.v_cache = fused_prefill_attention(
            x, self.w_attn_k, self.b_attn_k, self.w_proj_k, self.b_proj_k,
            self.k_cache, self.v_cache,
            n_head=self.n_head, n_group_head=self.n_group_head)

        self.next_token_idx += T
        return y


# --------------------------------------------------------------------------
# Pure-JAX f32 reference (correctness check only)
# --------------------------------------------------------------------------
def reference_prefill(x, w_attn, b_attn, w_proj, b_proj, n_head, n_group_head):
    B, T, C = x.shape
    hd = C // n_head
    n_kv_head = n_head // n_group_head
    kv_dim = n_kv_head * hd
    qkv = x @ w_attn + b_attn
    q = qkv[..., :C]
    k = qkv[..., C:C + kv_dim]
    v = qkv[..., C + kv_dim:]
    q = q.reshape(B, T, n_head, hd).transpose(0, 2, 1, 3)
    k = k.reshape(B, T, n_kv_head, hd).transpose(0, 2, 1, 3)
    v = v.reshape(B, T, n_kv_head, hd).transpose(0, 2, 1, 3)
    k_rep = jnp.repeat(k, n_group_head, axis=1)
    v_rep = jnp.repeat(v, n_group_head, axis=1)
    att = (q @ jnp.swapaxes(k_rep, -1, -2)) / math.sqrt(hd)
    mask = jnp.tril(jnp.ones((T, T), bool))
    att = jnp.where(mask[None, None], att, -jnp.inf)
    att = jax.nn.softmax(att, axis=-1)
    y = (att @ v_rep).transpose(0, 2, 1, 3).reshape(B, T, C)
    y = y @ w_proj + b_proj
    return y, k, v


# --------------------------------------------------------------------------
if __name__ == "__main__":
    cfg = Config(n_embd=32, n_head=4, n_group_head=2, block_size=16,
                 num_return_sequences=2)
    key = jax.random.PRNGKey(0)
    k_param, k_x = jax.random.split(key)

    mod = KVCacheCausalSelfAttentionPallas(cfg, k_param)

    B, T, C = cfg.num_return_sequences, 8, cfg.n_embd
    x = jax.random.normal(k_x, (B, T, C), jnp.float32)

    y = mod(x)
    y = jax.block_until_ready(y)

    y_ref, k_ref, v_ref = reference_prefill(
        x, mod.w_attn, mod.b_attn, mod.w_proj, mod.b_proj,
        mod.n_head, mod.n_group_head)

    assert y.shape == (B, T, C)
    # bf16 MXU inputs (f32 accumulation) vs. a pure-f32 reference -> modest tol
    assert jnp.allclose(y, y_ref, atol=2e-2, rtol=2e-2), "output mismatch"
    assert jnp.allclose(mod.k_cache[:, :, :T, :], k_ref, atol=2e-2, rtol=2e-2), \
        "k_cache mismatch"
    assert jnp.allclose(mod.v_cache[:, :, :T, :], v_ref, atol=2e-2, rtol=2e-2), \
        "v_cache mismatch"
    # tail of the cache beyond T must stay untouched (zeros from init)
    assert jnp.all(mod.k_cache[:, :, T:, :] == 0) and jnp.all(mod.v_cache[:, :, T:, :] == 0)

    print("KERNEL_OK")
</pallas_src>

<mosaic_0001>
module attributes {stable_mosaic.version = 11 : i64} {
  func.func @_fused_prefill_kernel(%arg0: memref<16x32xf32, #tpu.memory_space<vmem>>, %arg1: memref<32x64xbf16, #tpu.memory_space<vmem>>, %arg2: memref<1x64xf32, #tpu.memory_space<vmem>>, %arg3: memref<4x8x32xbf16, #tpu.memory_space<vmem>>, %arg4: memref<1x32xf32, #tpu.memory_space<vmem>>, %arg5: memref<2x2x16x8xf32, #tpu.memory_space<vmem>>, %arg6: memref<2x2x16x8xf32, #tpu.memory_space<vmem>>, %arg7: memref<16x32xf32, #tpu.memory_space<vmem>>, %arg8: memref<2x2x16x8xf32, #tpu.memory_space<vmem>>, %arg9: memref<2x2x16x8xf32, #tpu.memory_space<vmem>>) attributes {dimension_semantics = [], scalar_prefetch = 0 : i64, scratch_operands = 0 : i64, tpu.core_type = #tpu.core_type<tc>} {
    %c0 = arith.constant 0 : index
    %c0_0 = arith.constant 0 : index
    %c0_1 = arith.constant 0 : index
    %c0_2 = arith.constant 0 : index
    %0 = vector.load %arg5[%c0, %c0_0, %c0_1, %c0_2] : memref<2x2x16x8xf32, #tpu.memory_space<vmem>>, vector<2x2x16x8xf32>
    %c0_3 = arith.constant 0 : index
    %c0_4 = arith.constant 0 : index
    %c0_5 = arith.constant 0 : index
    %c0_6 = arith.constant 0 : index
    %1 = vector.load %arg8[%c0_3, %c0_4, %c0_5, %c0_6] : memref<2x2x16x8xf32, #tpu.memory_space<vmem>>, vector<2x2x16x8xf32>
    tpu.vector_store %arg8[%c0_3, %c0_4, %c0_5, %c0_6], %0 {strides = array<i32>} : memref<2x2x16x8xf32, #tpu.memory_space<vmem>>, vector<2x2x16x8xf32>,
    %c0_7 = arith.constant 0 : index
    %c0_8 = arith.constant 0 : index
    %c0_9 = arith.constant 0 : index
    %c0_10 = arith.constant 0 : index
    %2 = vector.load %arg6[%c0_7, %c0_8, %c0_9, %c0_10] : memref<2x2x16x8xf32, #tpu.memory_space<vmem>>, vector<2x2x16x8xf32>
    %c0_11 = arith.constant 0 : index
    %c0_12 = arith.constant 0 : index
    %c0_13 = arith.constant 0 : index
    %c0_14 = arith.constant 0 : index
    %3 = vector.load %arg9[%c0_11, %c0_12, %c0_13, %c0_14] : memref<2x2x16x8xf32, #tpu.memory_space<vmem>>, vector<2x2x16x8xf32>
    tpu.vector_store %arg9[%c0_11, %c0_12, %c0_13, %c0_14], %2 {strides = array<i32>} : memref<2x2x16x8xf32, #tpu.memory_space<vmem>>, vector<2x2x16x8xf32>,
    %c0_15 = arith.constant 0 : index
    %c0_16 = arith.constant 0 : index
    %4 = vector.load %arg0[%c0_15, %c0_16] : memref<16x32xf32, #tpu.memory_space<vmem>>, vector<16x32xf32>
    %5 = arith.truncf %4 : vector<16x32xf32> to vector<16x32xbf16>
    %c0_17 = arith.constant 0 : index
    %c0_18 = arith.constant 0 : index
    %6 = vector.load %arg1[%c0_17, %c0_18] : memref<32x64xbf16, #tpu.memory_space<vmem>>, vector<32x64xbf16>
    %cst = arith.constant dense<0.000000e+00> : vector<16x64xf32>
    %7 = tpu.matmul %5, %6, %cst {dimension_numbers = #tpu.dot_dimension_numbers<[1], [0], [0], [1], [0, 0, 1, 1], [], []>} : vector<16x32xbf16>, vector<32x64xbf16>, vector<16x64xf32> -> vector<16x64xf32>
    %c0_19 = arith.constant 0 : index
    %c0_20 = arith.constant 0 : index
    %8 = vector.load %arg2[%c0_19, %c0_20] : memref<1x64xf32, #tpu.memory_space<vmem>>, vector<1x64xf32>
    %9 = vector.broadcast %8 : vector<1x64xf32> to vector<16x64xf32>
    %10 = arith.addf %7, %9 : vector<16x64xf32>
    %11 = tpu.iota {dimensions = array<i32: 0>} : vector<8x8xi32>
    %12 = tpu.iota {dimensions = array<i32: 1>} : vector<8x8xi32>
    %13 = arith.cmpi sle, %12, %11 : vector<8x8xi32>
    %14 = vector.extract_strided_slice %10 {offsets = [0, 0], sizes = [8, 64], strides = [1, 1]} : vector<16x64xf32> to vector<8x64xf32>
    %15 = vector.extract_strided_slice %14 {offsets = [0, 32], sizes = [8, 16], strides = [1, 1]} : vector<8x64xf32> to vector<8x16xf32>
    %16 = vector.extract_strided_slice %14 {offsets = [0, 48], sizes = [8, 16], strides = [1, 1]} : vector<8x64xf32> to vector<8x16xf32>
    %17 = vector.extract_strided_slice %15 {offsets = [0, 0], sizes = [8, 8], strides = [1, 1]} : vector<8x16xf32> to vector<8x8xf32>
    %c0_21 = arith.constant 0 : index
    %c0_22 = arith.constant 0 : index
    %c0_23 = arith.constant 0 : index
    %c0_24 = arith.constant 0 : index
    %18 = vector.load %arg8[%c0_21, %c0_22, %c0_23, %c0_24] : memref<2x2x16x8xf32, #tpu.memory_space<vmem>>, vector<1x1x8x8xf32>
    %19 = vector.shape_cast %18 : vector<1x1x8x8xf32> to vector<8x8xf32>
    %20 = vector.shape_cast %17 : vector<8x8xf32> to vector<1x1x8x8xf32>
    tpu.vector_store %arg8[%c0_21, %c0_22, %c0_23, %c0_24], %20 {strides = array<i32>} : memref<2x2x16x8xf32, #tpu.memory_space<vmem>>, vector<1x1x8x8xf32>,
    %21 = vector.extract_strided_slice %16 {offsets = [0, 0], sizes = [8, 8], strides = [1, 1]} : vector<8x16xf32> to vector<8x8xf32>
    %c0_25 = arith.constant 0 : index
    %c0_26 = arith.constant 0 : index
    %c0_27 = arith.constant 0 : index
    %c0_28 = arith.constant 0 : index
    %22 = vector.load %arg9[%c0_25, %c0_26, %c0_27, %c0_28] : memref<2x2x16x8xf32, #tpu.memory_space<vmem>>, vector<1x1x8x8xf32>
    %23 = vector.shape_cast %22 : vector<1x1x8x8xf32> to vector<8x8xf32>
    %24 = vector.shape_cast %21 : vector<8x8xf32> to vector<1x1x8x8xf32>
    tpu.vector_store %arg9[%c0_25, %c0_26, %c0_27, %c0_28], %24 {strides = array<i32>} : memref<2x2x16x8xf32, #tpu.memory_space<vmem>>, vector<1x1x8x8xf32>,
    %25 = vector.extract_strided_slice %15 {offsets = [0, 8], sizes = [8, 8], strides = [1, 1]} : vector<8x16xf32> to vector<8x8xf32>
    %c0_29 = arith.constant 0 : index
    %c1 = arith.constant 1 : index
    %c0_30 = arith.constant 0 : index
    %c0_31 = arith.constant 0 : index
    %26 = vector.load %arg8[%c0_29, %c1, %c0_30, %c0_31] : memref<2x2x16x8xf32, #tpu.memory_space<vmem>>, vector<1x1x8x8xf32>
    %27 = vector.shape_cast %26 : vector<1x1x8x8xf32> to vector<8x8xf32>
    %28 = vector.shape_cast %25 : vector<8x8xf32> to vector<1x1x8x8xf32>
    tpu.vector_store %arg8[%c0_29, %c1, %c0_30, %c0_31], %28 {strides = array<i32>} : memref<2x2x16x8xf32, #tpu.memory_space<vmem>>, vector<1x1x8x8xf32>,
    %29 = vector.extract_strided_slice %16 {offsets = [0, 8], sizes = [8, 8], strides = [1, 1]} : vector<8x16xf32> to vector<8x8xf32>
    %c0_32 = arith.constant 0 : index
    %c1_33 = arith.constant 1 : index
    %c0_34 = arith.constant 0 : index
    %c0_35 = arith.constant 0 : index
    %30 = vector.load %arg9[%c0_32, %c1_33, %c0_34, %c0_35] : memref<2x2x16x8xf32, #tpu.memory_space<vmem>>, vector<1x1x8x8xf32>
    %31 = vector.shape_cast %30 : vector<1x1x8x8xf32> to vector<8x8xf32>
    %32 = vector.shape_cast %29 : vector<8x8xf32> to vector<1x1x8x8xf32>
    tpu.vector_store %arg9[%c0_32, %c1_33, %c0_34, %c0_35], %32 {strides = array<i32>} : memref<2x2x16x8xf32, #tpu.memory_space<vmem>>, vector<1x1x8x8xf32>,
    %cst_36 = arith.constant 0.000000e+00 : f32
    %33 = vector.broadcast %cst_36 : f32 to vector<8x32xf32>
    %34 = vector.extract_strided_slice %14 {offsets = [0, 0], sizes = [8, 8], strides = [1, 1]} : vector<8x64xf32> to vector<8x8xf32>
    %35 = arith.truncf %34 : vector<8x8xf32> to vector<8x8xbf16>
    %36 = vector.extract_strided_slice %15 {offsets = [0, 0], sizes = [8, 8], strides = [1, 1]} : vector<8x16xf32> to vector<8x8xf32>
    %37 = arith.truncf %36 : vector<8x8xf32> to vector<8x8xbf16>
    %38 = vector.extract_strided_slice %16 {offsets = [0, 0], sizes = [8, 8], strides = [1, 1]} : vector<8x16xf32> to vector<8x8xf32>
    %39 = arith.truncf %38 : vector<8x8xf32> to vector<8x8xbf16>
    %cst_37 = arith.constant dense<0.000000e+00> : vector<8x8xf32>
    %40 = tpu.matmul %35, %37, %cst_37 {dimension_numbers = #tpu.dot_dimension_numbers<[1], [1], [0], [0], [0, 0, 1, 0], [], []>} : vector<8x8xbf16>, vector<8x8xbf16>, vector<8x8xf32> -> vector<8x8xf32>
    %cst_38 = arith.constant -1.000000e+30 : f32
    %41 = vector.broadcast %cst_38 : f32 to vector<8x8xf32>
    %42 = arith.select %13, %40, %41 : vector<8x8xi1>, vector<8x8xf32>
    %cst_39 = arith.constant dense<0xFF800000> : vector<8xf32>
    %43 = vector.multi_reduction <maximumf>, %42, %cst_39 [1] : vector<8x8xf32> to vector<8xf32>
    %44 = vector.shape_cast %43 : vector<8xf32> to vector<8x1xf32>
    %45 = vector.broadcast %44 : vector<8x1xf32> to vector<8x8xf32>
    %46 = arith.subf %42, %45 : vector<8x8xf32>
    %47 = math.exp %46 : vector<8x8xf32>
    %cst_40 = arith.constant dense<0.000000e+00> : vector<8xf32>
    %48 = vector.multi_reduction <add>, %47, %cst_40 [1] : vector<8x8xf32> to vector<8xf32>
    %49 = vector.shape_cast %48 : vector<8xf32> to vector<8x1xf32>
    %50 = arith.truncf %47 : vector<8x8xf32> to vector<8x8xbf16>
    %cst_41 = arith.constant dense<0.000000e+00> : vector<8x8xf32>
    %51 = tpu.matmul %50, %39, %cst_41 {dimension_numbers = #tpu.dot_dimension_numbers<[1], [0], [0], [1], [0, 0, 1, 1], [], []>} : vector<8x8xbf16>, vector<8x8xbf16>, vector<8x8xf32> -> vector<8x8xf32>
    %52 = tpu.reciprocal %49 {approx = true} : vector<8x1xf32> -> vector<8x1xf32>
    %53 = vector.broadcast %52 : vector<8x1xf32> to vector<8x8xf32>
    %54 = arith.mulf %51, %53 : vector<8x8xf32>
    %55 = arith.truncf %54 : vector<8x8xf32> to vector<8x8xbf16>
    %c0_42 = arith.constant 0 : index
    %c0_43 = arith.constant 0 : index
    %c0_44 = arith.constant 0 : index
    %56 = vector.load %arg3[%c0_42, %c0_43, %c0_44] : memref<4x8x32xbf16, #tpu.memory_space<vmem>>, vector<1x8x32xbf16>
    %57 = vector.shape_cast %56 : vector<1x8x32xbf16> to vector<8x32xbf16>
    %cst_45 = arith.constant dense<0.000000e+00> : vector<8x32xf32>
    %58 = tpu.matmul %55, %57, %cst_45 {dimension_numbers = #tpu.dot_dimension_numbers<[1], [0], [0], [1], [0, 0, 1, 1], [], []>} : vector<8x8xbf16>, vector<8x32xbf16>, vector<8x32xf32> -> vector<8x32xf32>
    %59 = arith.addf %33, %58 : vector<8x32xf32>
    %60 = vector.extract_strided_slice %14 {offsets = [0, 8], sizes = [8, 8], strides = [1, 1]} : vector<8x64xf32> to vector<8x8xf32>
    %61 = arith.truncf %60 : vector<8x8xf32> to vector<8x8xbf16>
    %62 = vector.extract_strided_slice %15 {offsets = [0, 0], sizes = [8, 8], strides = [1, 1]} : vector<8x16xf32> to vector<8x8xf32>
    %63 = arith.truncf %62 : vector<8x8xf32> to vector<8x8xbf16>
    %64 = vector.extract_strided_slice %16 {offsets = [0, 0], sizes = [8, 8], strides = [1, 1]} : vector<8x16xf32> to vector<8x8xf32>
    %65 = arith.truncf %64 : vector<8x8xf32> to vector<8x8xbf16>
    %cst_46 = arith.constant dense<0.000000e+00> : vector<8x8xf32>
    %66 = tpu.matmul %61, %63, %cst_46 {dimension_numbers = #tpu.dot_dimension_numbers<[1], [1], [0], [0], [0, 0, 1, 0], [], []>} : vector<8x8xbf16>, vector<8x8xbf16>, vector<8x8xf32> -> vector<8x8xf32>
    %cst_47 = arith.constant -1.000000e+30 : f32
    %67 = vector.broadcast %cst_47 : f32 to vector<8x8xf32>
    %68 = arith.select %13, %66, %67 : vector<8x8xi1>, vector<8x8xf32>
    %cst_48 = arith.constant dense<0xFF800000> : vector<8xf32>
    %69 = vector.multi_reduction <maximumf>, %68, %cst_48 [1] : vector<8x8xf32> to vector<8xf32>
    %70 = vector.shape_cast %69 : vector<8xf32> to vector<8x1xf32>
    %71 = vector.broadcast %70 : vector<8x1xf32> to vector<8x8xf32>
    %72 = arith.subf %68, %71 : vector<8x8xf32>
    %73 = math.exp %72 : vector<8x8xf32>
    %cst_49 = arith.constant dense<0.000000e+00> : vector<8xf32>
    %74 = vector.multi_reduction <add>, %73, %cst_49 [1] : vector<8x8xf32> to vector<8xf32>
    %75 = vector.shape_cast %74 : vector<8xf32> to vector<8x1xf32>
    %76 = arith.truncf %73 : vector<8x8xf32> to vector<8x8xbf16>
    %cst_50 = arith.constant dense<0.000000e+00> : vector<8x8xf32>
    %77 = tpu.matmul %76, %65, %cst_50 {dimension_numbers = #tpu.dot_dimension_numbers<[1], [0], [0], [1], [0, 0, 1, 1], [], []>} : vector<8x8xbf16>, vector<8x8xbf16>, vector<8x8xf32> -> vector<8x8xf32>
    %78 = tpu.reciprocal %75 {approx = true} : vector<8x1xf32> -> vector<8x1xf32>
    %79 = vector.broadcast %78 : vector<8x1xf32> to vector<8x8xf32>
    %80 = arith.mulf %77, %79 : vector<8x8xf32>
    %81 = arith.truncf %80 : vector<8x8xf32> to vector<8x8xbf16>
    %c1_51 = arith.constant 1 : index
    %c0_52 = arith.constant 0 : index
    %c0_53 = arith.constant 0 : index
    %82 = vector.load %arg3[%c1_51, %c0_52, %c0_53] : memref<4x8x32xbf16, #tpu.memory_space<vmem>>, vector<1x8x32xbf16>
    %83 = vector.shape_cast %82 : vector<1x8x32xbf16> to vector<8x32xbf16>
    %cst_54 = arith.constant dense<0.000000e+00> : vector<8x32xf32>
    %84 = tpu.matmul %81, %83, %cst_54 {dimension_numbers = #tpu.dot_dimension_numbers<[1], [0], [0], [1], [0, 0, 1, 1], [], []>} : vector<8x8xbf16>, vector<8x32xbf16>, vector<8x32xf32> -> vector<8x32xf32>
    %85 = arith.addf %59, %84 : vector<8x32xf32>
    %86 = vector.extract_strided_slice %14 {offsets = [0, 16], sizes = [8, 8], strides = [1, 1]} : vector<8x64xf32> to vector<8x8xf32>
    %87 = arith.truncf %86 : vector<8x8xf32> to vector<8x8xbf16>
    %88 = vector.extract_strided_slice %15 {offsets = [0, 8], sizes = [8, 8], strides = [1, 1]} : vector<8x16xf32> to vector<8x8xf32>
    %89 = arith.truncf %88 : vector<8x8xf32> to vector<8x8xbf16>
    %90 = vector.extract_strided_slice %16 {offsets = [0, 8], sizes = [8, 8], strides = [1, 1]} : vector<8x16xf32> to vector<8x8xf32>
    %91 = arith.truncf %90 : vector<8x8xf32> to vector<8x8xbf16>
    %cst_55 = arith.constant dense<0.000000e+00> : vector<8x8xf32>
    %92 = tpu.matmul %87, %89, %cst_55 {dimension_numbers = #tpu.dot_dimension_numbers<[1], [1], [0], [0], [0, 0, 1, 0], [], []>} : vector<8x8xbf16>, vector<8x8xbf16>, vector<8x8xf32> -> vector<8x8xf32>
    %cst_56 = arith.constant -1.000000e+30 : f32
    %93 = vector.broadcast %cst_56 : f32 to vector<8x8xf32>
    %94 = arith.select %13, %92, %93 : vector<8x8xi1>, vector<8x8xf32>
    %cst_57 = arith.constant dense<0xFF800000> : vector<8xf32>
    %95 = vector.multi_reduction <maximumf>, %94, %cst_57 [1] : vector<8x8xf32> to vector<8xf32>
    %96 = vector.shape_cast %95 : vector<8xf32> to vector<8x1xf32>
    %97 = vector.broadcast %96 : vector<8x1xf32> to vector<8x8xf32>
    %98 = arith.subf %94, %97 : vector<8x8xf32>
    %99 = math.exp %98 : vector<8x8xf32>
    %cst_58 = arith.constant dense<0.000000e+00> : vector<8xf32>
    %100 = vector.multi_reduction <add>, %99, %cst_58 [1] : vector<8x8xf32> to vector<8xf32>
    %101 = vector.shape_cast %100 : vector<8xf32> to vector<8x1xf32>
    %102 = arith.truncf %99 : vector<8x8xf32> to vector<8x8xbf16>
    %cst_59 = arith.constant dense<0.000000e+00> : vector<8x8xf32>
    %103 = tpu.matmul %102, %91, %cst_59 {dimension_numbers = #tpu.dot_dimension_numbers<[1], [0], [0], [1], [0, 0, 1, 1], [], []>} : vector<8x8xbf16>, vector<8x8xbf16>, vector<8x8xf32> -> vector<8x8xf32>
    %104 = tpu.reciprocal %101 {approx = true} : vector<8x1xf32> -> vector<8x1xf32>
    %105 = vector.broadcast %104 : vector<8x1xf32> to vector<8x8xf32>
    %106 = arith.mulf %103, %105 : vector<8x8xf32>
    %107 = arith.truncf %106 : vector<8x8xf32> to vector<8x8xbf16>
    %c2 = arith.constant 2 : index
    %c0_60 = arith.constant 0 : index
    %c0_61 = arith.constant 0 : index
    %108 = vector.load %arg3[%c2, %c0_60, %c0_61] : memref<4x8x32xbf16, #tpu.memory_space<vmem>>, vector<1x8x32xbf16>
    %109 = vector.shape_cast %108 : vector<1x8x32xbf16> to vector<8x32xbf16>
    %cst_62 = arith.constant dense<0.000000e+00> : vector<8x32xf32>
    %110 = tpu.matmul %107, %109, %cst_62 {dimension_numbers = #tpu.dot_dimension_numbers<[1], [0], [0], [1], [0, 0, 1, 1], [], []>} : vector<8x8xbf16>, vector<8x32xbf16>, vector<8x32xf32> -> vector<8x32xf32>
    %111 = arith.addf %85, %110 : vector<8x32xf32>
    %112 = vector.extract_strided_slice %14 {offsets = [0, 24], sizes = [8, 8], strides = [1, 1]} : vector<8x64xf32> to vector<8x8xf32>
    %113 = arith.truncf %112 : vector<8x8xf32> to vector<8x8xbf16>
    %114 = vector.extract_strided_slice %15 {offsets = [0, 8], sizes = [8, 8], strides = [1, 1]} : vector<8x16xf32> to vector<8x8xf32>
    %115 = arith.truncf %114 : vector<8x8xf32> to vector<8x8xbf16>
    %116 = vector.extract_strided_slice %16 {offsets = [0, 8], sizes = [8, 8], strides = [1, 1]} : vector<8x16xf32> to vector<8x8xf32>
    %117 = arith.truncf %116 : vector<8x8xf32> to vector<8x8xbf16>
    %cst_63 = arith.constant dense<0.000000e+00> : vector<8x8xf32>
    %118 = tpu.matmul %113, %115, %cst_63 {dimension_numbers = #tpu.dot_dimension_numbers<[1], [1], [0], [0], [0, 0, 1, 0], [], []>} : vector<8x8xbf16>, vector<8x8xbf16>, vector<8x8xf32> -> vector<8x8xf32>
    %cst_64 = arith.constant -1.000000e+30 : f32
    %119 = vector.broadcast %cst_64 : f32 to vector<8x8xf32>
    %120 = arith.select %13, %118, %119 : vector<8x8xi1>, vector<8x8xf32>
    %cst_65 = arith.constant dense<0xFF800000> : vector<8xf32>
    %121 = vector.multi_reduction <maximumf>, %120, %cst_65 [1] : vector<8x8xf32> to vector<8xf32>
    %122 = vector.shape_cast %121 : vector<8xf32> to vector<8x1xf32>
    %123 = vector.broadcast %122 : vector<8x1xf32> to vector<8x8xf32>
    %124 = arith.subf %120, %123 : vector<8x8xf32>
    %125 = math.exp %124 : vector<8x8xf32>
    %cst_66 = arith.constant dense<0.000000e+00> : vector<8xf32>
    %126 = vector.multi_reduction <add>, %125, %cst_66 [1] : vector<8x8xf32> to vector<8xf32>
    %127 = vector.shape_cast %126 : vector<8xf32> to vector<8x1xf32>
    %128 = arith.truncf %125 : vector<8x8xf32> to vector<8x8xbf16>
    %cst_67 = arith.constant dense<0.000000e+00> : vector<8x8xf32>
    %129 = tpu.matmul %128, %117, %cst_67 {dimension_numbers = #tpu.dot_dimension_numbers<[1], [0], [0], [1], [0, 0, 1, 1], [], []>} : vector<8x8xbf16>, vector<8x8xbf16>, vector<8x8xf32> -> vector<8x8xf32>
    %130 = tpu.reciprocal %127 {approx = true} : vector<8x1xf32> -> vector<8x1xf32>
    %131 = vector.broadcast %130 : vector<8x1xf32> to vector<8x8xf32>
    %132 = arith.mulf %129, %131 : vector<8x8xf32>
    %133 = arith.truncf %132 : vector<8x8xf32> to vector<8x8xbf16>
    %c3 = arith.constant 3 : index
    %c0_68 = arith.constant 0 : index
    %c0_69 = arith.constant 0 : index
    %134 = vector.load %arg3[%c3, %c0_68, %c0_69] : memref<4x8x32xbf16, #tpu.memory_space<vmem>>, vector<1x8x32xbf16>
    %135 = vector.shape_cast %134 : vector<1x8x32xbf16> to vector<8x32xbf16>
    %cst_70 = arith.constant dense<0.000000e+00> : vector<8x32xf32>
    %136 = tpu.matmul %133, %135, %cst_70 {dimension_numbers = #tpu.dot_dimension_numbers<[1], [0], [0], [1], [0, 0, 1, 1], [], []>} : vector<8x8xbf16>, vector<8x32xbf16>, vector<8x32xf32> -> vector<8x32xf32>
    %137 = arith.addf %111, %136 : vector<8x32xf32>
    %c0_71 = arith.constant 0 : index
    %c0_72 = arith.constant 0 : index
    %138 = vector.load %arg4[%c0_71, %c0_72] : memref<1x32xf32, #tpu.memory_space<vmem>>, vector<1x32xf32>
    %139 = vector.broadcast %138 : vector<1x32xf32> to vector<8x32xf32>
    %140 = arith.addf %137, %139 : vector<8x32xf32>
    %c0_73 = arith.constant 0 : index
    %c0_74 = arith.constant 0 : index
    %141 = vector.load %arg7[%c0_73, %c0_74] : memref<16x32xf32, #tpu.memory_space<vmem>>, vector<8x32xf32>
    tpu.vector_store %arg7[%c0_73, %c0_74], %140 {strides = array<i32>} : memref<16x32xf32, #tpu.memory_space<vmem>>, vector<8x32xf32>,
    %142 = vector.extract_strided_slice %10 {offsets = [8, 0], sizes = [8, 64], strides = [1, 1]} : vector<16x64xf32> to vector<8x64xf32>
    %143 = vector.extract_strided_slice %142 {offsets = [0, 32], sizes = [8, 16], strides = [1, 1]} : vector<8x64xf32> to vector<8x16xf32>
    %144 = vector.extract_strided_slice %142 {offsets = [0, 48], sizes = [8, 16], strides = [1, 1]} : vector<8x64xf32> to vector<8x16xf32>
    %145 = vector.extract_strided_slice %143 {offsets = [0, 0], sizes = [8, 8], strides = [1, 1]} : vector<8x16xf32> to vector<8x8xf32>
    %c1_75 = arith.constant 1 : index
    %c0_76 = arith.constant 0 : index
    %c0_77 = arith.constant 0 : index
    %c0_78 = arith.constant 0 : index
    %146 = vector.load %arg8[%c1_75, %c0_76, %c0_77, %c0_78] : memref<2x2x16x8xf32, #tpu.memory_space<vmem>>, vector<1x1x8x8xf32>
    %147 = vector.shape_cast %146 : vector<1x1x8x8xf32> to vector<8x8xf32>
    %148 = vector.shape_cast %145 : vector<8x8xf32> to vector<1x1x8x8xf32>
    tpu.vector_store %arg8[%c1_75, %c0_76, %c0_77, %c0_78], %148 {strides = array<i32>} : memref<2x2x16x8xf32, #tpu.memory_space<vmem>>, vector<1x1x8x8xf32>,
    %149 = vector.extract_strided_slice %144 {offsets = [0, 0], sizes = [8, 8], strides = [1, 1]} : vector<8x16xf32> to vector<8x8xf32>
    %c1_79 = arith.constant 1 : index
    %c0_80 = arith.constant 0 : index
    %c0_81 = arith.constant 0 : index
    %c0_82 = arith.constant 0 : index
    %150 = vector.load %arg9[%c1_79, %c0_80, %c0_81, %c0_82] : memref<2x2x16x8xf32, #tpu.memory_space<vmem>>, vector<1x1x8x8xf32>
    %151 = vector.shape_cast %150 : vector<1x1x8x8xf32> to vector<8x8xf32>
    %152 = vector.shape_cast %149 : vector<8x8xf32> to vector<1x1x8x8xf32>
    tpu.vector_store %arg9[%c1_79, %c0_80, %c0_81, %c0_82], %152 {strides = array<i32>} : memref<2x2x16x8xf32, #tpu.memory_space<vmem>>, vector<1x1x8x8xf32>,
    %153 = vector.extract_strided_slice %143 {offsets = [0, 8], sizes = [8, 8], strides = [1, 1]} : vector<8x16xf32> to vector<8x8xf32>
    %c1_83 = arith.constant 1 : index
    %c1_84 = arith.constant 1 : index
    %c0_85 = arith.constant 0 : index
    %c0_86 = arith.constant 0 : index
    %154 = vector.load %arg8[%c1_83, %c1_84, %c0_85, %c0_86] : memref<2x2x16x8xf32, #tpu.memory_space<vmem>>, vector<1x1x8x8xf32>
    %155 = vector.shape_cast %154 : vector<1x1x8x8xf32> to vector<8x8xf32>
    %156 = vector.shape_cast %153 : vector<8x8xf32> to vector<1x1x8x8xf32>
    tpu.vector_store %arg8[%c1_83, %c1_84, %c0_85, %c0_86], %156 {strides = array<i32>} : memref<2x2x16x8xf32, #tpu.memory_space<vmem>>, vector<1x1x8x8xf32>,
    %157 = vector.extract_strided_slice %144 {offsets = [0, 8], sizes = [8, 8], strides = [1, 1]} : vector<8x16xf32> to vector<8x8xf32>
    %c1_87 = arith.constant 1 : index
    %c1_88 = arith.constant 1 : index
    %c0_89 = arith.constant 0 : index
    %c0_90 = arith.constant 0 : index
    %158 = vector.load %arg9[%c1_87, %c1_88, %c0_89, %c0_90] : memref<2x2x16x8xf32, #tpu.memory_space<vmem>>, vector<1x1x8x8xf32>
    %159 = vector.shape_cast %158 : vector<1x1x8x8xf32> to vector<8x8xf32>
    %160 = vector.shape_cast %157 : vector<8x8xf32> to vector<1x1x8x8xf32>
    tpu.vector_store %arg9[%c1_87, %c1_88, %c0_89, %c0_90], %160 {strides = array<i32>} : memref<2x2x16x8xf32, #tpu.memory_space<vmem>>, vector<1x1x8x8xf32>,
    %cst_91 = arith.constant 0.000000e+00 : f32
    %161 = vector.broadcast %cst_91 : f32 to vector<8x32xf32>
    %162 = vector.extract_strided_slice %142 {offsets = [0, 0], sizes = [8, 8], strides = [1, 1]} : vector<8x64xf32> to vector<8x8xf32>
    %163 = arith.truncf %162 : vector<8x8xf32> to vector<8x8xbf16>
    %164 = vector.extract_strided_slice %143 {offsets = [0, 0], sizes = [8, 8], strides = [1, 1]} : vector<8x16xf32> to vector<8x8xf32>
    %165 = arith.truncf %164 : vector<8x8xf32> to vector<8x8xbf16>
    %166 = vector.extract_strided_slice %144 {offsets = [0, 0], sizes = [8, 8], strides = [1, 1]} : vector<8x16xf32> to vector<8x8xf32>
    %167 = arith.truncf %166 : vector<8x8xf32> to vector<8x8xbf16>
    %cst_92 = arith.constant dense<0.000000e+00> : vector<8x8xf32>
    %168 = tpu.matmul %163, %165, %cst_92 {dimension_numbers = #tpu.dot_dimension_numbers<[1], [1], [0], [0], [0, 0, 1, 0], [], []>} : vector<8x8xbf16>, vector<8x8xbf16>, vector<8x8xf32> -> vector<8x8xf32>
    %cst_93 = arith.constant -1.000000e+30 : f32
    %169 = vector.broadcast %cst_93 : f32 to vector<8x8xf32>
    %170 = arith.select %13, %168, %169 : vector<8x8xi1>, vector<8x8xf32>
    %cst_94 = arith.constant dense<0xFF800000> : vector<8xf32>
    %171 = vector.multi_reduction <maximumf>, %170, %cst_94 [1] : vector<8x8xf32> to vector<8xf32>
    %172 = vector.shape_cast %171 : vector<8xf32> to vector<8x1xf32>
    %173 = vector.broadcast %172 : vector<8x1xf32> to vector<8x8xf32>
    %174 = arith.subf %170, %173 : vector<8x8xf32>
    %175 = math.exp %174 : vector<8x8xf32>
    %cst_95 = arith.constant dense<0.000000e+00> : vector<8xf32>
    %176 = vector.multi_reduction <add>, %175, %cst_95 [1] : vector<8x8xf32> to vector<8xf32>
    %177 = vector.shape_cast %176 : vector<8xf32> to vector<8x1xf32>
    %178 = arith.truncf %175 : vector<8x8xf32> to vector<8x8xbf16>
    %cst_96 = arith.constant dense<0.000000e+00> : vector<8x8xf32>
    %179 = tpu.matmul %178, %167, %cst_96 {dimension_numbers = #tpu.dot_dimension_numbers<[1], [0], [0], [1], [0, 0, 1, 1], [], []>} : vector<8x8xbf16>, vector<8x8xbf16>, vector<8x8xf32> -> vector<8x8xf32>
    %180 = tpu.reciprocal %177 {approx = true} : vector<8x1xf32> -> vector<8x1xf32>
    %181 = vector.broadcast %180 : vector<8x1xf32> to vector<8x8xf32>
    %182 = arith.mulf %179, %181 : vector<8x8xf32>
    %183 = arith.truncf %182 : vector<8x8xf32> to vector<8x8xbf16>
    %c0_97 = arith.constant 0 : index
    %c0_98 = arith.constant 0 : index
    %c0_99 = arith.constant 0 : index
    %184 = vector.load %arg3[%c0_97, %c0_98, %c0_99] : memref<4x8x32xbf16, #tpu.memory_space<vmem>>, vector<1x8x32xbf16>
    %185 = vector.shape_cast %184 : vector<1x8x32xbf16> to vector<8x32xbf16>
    %cst_100 = arith.constant dense<0.000000e+00> : vector<8x32xf32>
    %186 = tpu.matmul %183, %185, %cst_100 {dimension_numbers = #tpu.dot_dimension_numbers<[1], [0], [0], [1], [0, 0, 1, 1], [], []>} : vector<8x8xbf16>, vector<8x32xbf16>, vector<8x32xf32> -> vector<8x32xf32>
    %187 = arith.addf %161, %186 : vector<8x32xf32>
    %188 = vector.extract_strided_slice %142 {offsets = [0, 8], sizes = [8, 8], strides = [1, 1]} : vector<8x64xf32> to vector<8x8xf32>
    %189 = arith.truncf %188 : vector<8x8xf32> to vector<8x8xbf16>
    %190 = vector.extract_strided_slice %143 {offsets = [0, 0], sizes = [8, 8], strides = [1, 1]} : vector<8x16xf32> to vector<8x8xf32>
    %191 = arith.truncf %190 : vector<8x8xf32> to vector<8x8xbf16>
    %192 = vector.extract_strided_slice %144 {offsets = [0, 0], sizes = [8, 8], strides = [1, 1]} : vector<8x16xf32> to vector<8x8xf32>
    %193 = arith.truncf %192 : vector<8x8xf32> to vector<8x8xbf16>
    %cst_101 = arith.constant dense<0.000000e+00> : vector<8x8xf32>
    %194 = tpu.matmul %189, %191, %cst_101 {dimension_numbers = #tpu.dot_dimension_numbers<[1], [1], [0], [0], [0, 0, 1, 0], [], []>} : vector<8x8xbf16>, vector<8x8xbf16>, vector<8x8xf32> -> vector<8x8xf32>
    %cst_102 = arith.constant -1.000000e+30 : f32
    %195 = vector.broadcast %cst_102 : f32 to vector<8x8xf32>
    %196 = arith.select %13, %194, %195 : vector<8x8xi1>, vector<8x8xf32>
    %cst_103 = arith.constant dense<0xFF800000> : vector<8xf32>
    %197 = vector.multi_reduction <maximumf>, %196, %cst_103 [1] : vector<8x8xf32> to vector<8xf32>
    %198 = vector.shape_cast %197 : vector<8xf32> to vector<8x1xf32>
    %199 = vector.broadcast %198 : vector<8x1xf32> to vector<8x8xf32>
    %200 = arith.subf %196, %199 : vector<8x8xf32>
    %201 = math.exp %200 : vector<8x8xf32>
    %cst_104 = arith.constant dense<0.000000e+00> : vector<8xf32>
    %202 = vector.multi_reduction <add>, %201, %cst_104 [1] : vector<8x8xf32> to vector<8xf32>
    %203 = vector.shape_cast %202 : vector<8xf32> to vector<8x1xf32>
    %204 = arith.truncf %201 : vector<8x8xf32> to vector<8x8xbf16>
    %cst_105 = arith.constant dense<0.000000e+00> : vector<8x8xf32>
    %205 = tpu.matmul %204, %193, %cst_105 {dimension_numbers = #tpu.dot_dimension_numbers<[1], [0], [0], [1], [0, 0, 1, 1], [], []>} : vector<8x8xbf16>, vector<8x8xbf16>, vector<8x8xf32> -> vector<8x8xf32>
    %206 = tpu.reciprocal %203 {approx = true} : vector<8x1xf32> -> vector<8x1xf32>
    %207 = vector.broadcast %206 : vector<8x1xf32> to vector<8x8xf32>
    %208 = arith.mulf %205, %207 : vector<8x8xf32>
    %209 = arith.truncf %208 : vector<8x8xf32> to vector<8x8xbf16>
    %c1_106 = arith.constant 1 : index
    %c0_107 = arith.constant 0 : index
    %c0_108 = arith.constant 0 : index
    %210 = vector.load %arg3[%c1_106, %c0_107, %c0_108] : memref<4x8x32xbf16, #tpu.memory_space<vmem>>, vector<1x8x32xbf16>
    %211 = vector.shape_cast %210 : vector<1x8x32xbf16> to vector<8x32xbf16>
    %cst_109 = arith.constant dense<0.000000e+00> : vector<8x32xf32>
    %212 = tpu.matmul %209, %211, %cst_109 {dimension_numbers = #tpu.dot_dimension_numbers<[1], [0], [0], [1], [0, 0, 1, 1], [], []>} : vector<8x8xbf16>, vector<8x32xbf16>, vector<8x32xf32> -> vector<8x32xf32>
    %213 = arith.addf %187, %212 : vector<8x32xf32>
    %214 = vector.extract_strided_slice %142 {offsets = [0, 16], sizes = [8, 8], strides = [1, 1]} : vector<8x64xf32> to vector<8x8xf32>
    %215 = arith.truncf %214 : vector<8x8xf32> to vector<8x8xbf16>
    %216 = vector.extract_strided_slice %143 {offsets = [0, 8], sizes = [8, 8], strides = [1, 1]} : vector<8x16xf32> to vector<8x8xf32>
    %217 = arith.truncf %216 : vector<8x8xf32> to vector<8x8xbf16>
    %218 = vector.extract_strided_slice %144 {offsets = [0, 8], sizes = [8, 8], strides = [1, 1]} : vector<8x16xf32> to vector<8x8xf32>
    %219 = arith.truncf %218 : vector<8x8xf32> to vector<8x8xbf16>
    %cst_110 = arith.constant dense<0.000000e+00> : vector<8x8xf32>
    %220 = tpu.matmul %215, %217, %cst_110 {dimension_numbers = #tpu.dot_dimension_numbers<[1], [1], [0], [0], [0, 0, 1, 0], [], []>} : vector<8x8xbf16>, vector<8x8xbf16>, vector<8x8xf32> -> vector<8x8xf32>
    %cst_111 = arith.constant -1.000000e+30 : f32
    %221 = vector.broadcast %cst_111 : f32 to vector<8x8xf32>
    %222 = arith.select %13, %220, %221 : vector<8x8xi1>, vector<8x8xf32>
    %cst_112 = arith.constant dense<0xFF800000> : vector<8xf32>
    %223 = vector.multi_reduction <maximumf>, %222, %cst_112 [1] : vector<8x8xf32> to vector<8xf32>
    %224 = vector.shape_cast %223 : vector<8xf32> to vector<8x1xf32>
    %225 = vector.broadcast %224 : vector<8x1xf32> to vector<8x8xf32>
    %226 = arith.subf %222, %225 : vector<8x8xf32>
    %227 = math.exp %226 : vector<8x8xf32>
    %cst_113 = arith.constant dense<0.000000e+00> : vector<8xf32>
    %228 = vector.multi_reduction <add>, %227, %cst_113 [1] : vector<8x8xf32> to vector<8xf32>
    %229 = vector.shape_cast %228 : vector<8xf32> to vector<8x1xf32>
    %230 = arith.truncf %227 : vector<8x8xf32> to vector<8x8xbf16>
    %cst_114 = arith.constant dense<0.000000e+00> : vector<8x8xf32>
    %231 = tpu.matmul %230, %219, %cst_114 {dimension_numbers = #tpu.dot_dimension_numbers<[1], [0], [0], [1], [0, 0, 1, 1], [], []>} : vector<8x8xbf16>, vector<8x8xbf16>, vector<8x8xf32> -> vector<8x8xf32>
    %232 = tpu.reciprocal %229 {approx = true} : vector<8x1xf32> -> vector<8x1xf32>
    %233 = vector.broadcast %232 : vector<8x1xf32> to vector<8x8xf32>
    %234 = arith.mulf %231, %233 : vector<8x8xf32>
    %235 = arith.truncf %234 : vector<8x8xf32> to vector<8x8xbf16>
    %c2_115 = arith.constant 2 : index
    %c0_116 = arith.constant 0 : index
    %c0_117 = arith.constant 0 : index
    %236 = vector.load %arg3[%c2_115, %c0_116, %c0_117] : memref<4x8x32xbf16, #tpu.memory_space<vmem>>, vector<1x8x32xbf16>
    %237 = vector.shape_cast %236 : vector<1x8x32xbf16> to vector<8x32xbf16>
    %cst_118 = arith.constant dense<0.000000e+00> : vector<8x32xf32>
    %238 = tpu.matmul %235, %237, %cst_118 {dimension_numbers = #tpu.dot_dimension_numbers<[1], [0], [0], [1], [0, 0, 1, 1], [], []>} : vector<8x8xbf16>, vector<8x32xbf16>, vector<8x32xf32> -> vector<8x32xf32>
    %239 = arith.addf %213, %238 : vector<8x32xf32>
    %240 = vector.extract_strided_slice %142 {offsets = [0, 24], sizes = [8, 8], strides = [1, 1]} : vector<8x64xf32> to vector<8x8xf32>
    %241 = arith.truncf %240 : vector<8x8xf32> to vector<8x8xbf16>
    %242 = vector.extract_strided_slice %143 {offsets = [0, 8], sizes = [8, 8], strides = [1, 1]} : vector<8x16xf32> to vector<8x8xf32>
    %243 = arith.truncf %242 : vector<8x8xf32> to vector<8x8xbf16>
    %244 = vector.extract_strided_slice %144 {offsets = [0, 8], sizes = [8, 8], strides = [1, 1]} : vector<8x16xf32> to vector<8x8xf32>
    %245 = arith.truncf %244 : vector<8x8xf32> to vector<8x8xbf16>
    %cst_119 = arith.constant dense<0.000000e+00> : vector<8x8xf32>
    %246 = tpu.matmul %241, %243, %cst_119 {dimension_numbers = #tpu.dot_dimension_numbers<[1], [1], [0], [0], [0, 0, 1, 0], [], []>} : vector<8x8xbf16>, vector<8x8xbf16>, vector<8x8xf32> -> vector<8x8xf32>
    %cst_120 = arith.constant -1.000000e+30 : f32
    %247 = vector.broadcast %cst_120 : f32 to vector<8x8xf32>
    %248 = arith.select %13, %246, %247 : vector<8x8xi1>, vector<8x8xf32>
    %cst_121 = arith.constant dense<0xFF800000> : vector<8xf32>
    %249 = vector.multi_reduction <maximumf>, %248, %cst_121 [1] : vector<8x8xf32> to vector<8xf32>
    %250 = vector.shape_cast %249 : vector<8xf32> to vector<8x1xf32>
    %251 = vector.broadcast %250 : vector<8x1xf32> to vector<8x8xf32>
    %252 = arith.subf %248, %251 : vector<8x8xf32>
    %253 = math.exp %252 : vector<8x8xf32>
    %cst_122 = arith.constant dense<0.000000e+00> : vector<8xf32>
    %254 = vector.multi_reduction <add>, %253, %cst_122 [1] : vector<8x8xf32> to vector<8xf32>
    %255 = vector.shape_cast %254 : vector<8xf32> to vector<8x1xf32>
    %256 = arith.truncf %253 : vector<8x8xf32> to vector<8x8xbf16>
    %cst_123 = arith.constant dense<0.000000e+00> : vector<8x8xf32>
    %257 = tpu.matmul %256, %245, %cst_123 {dimension_numbers = #tpu.dot_dimension_numbers<[1], [0], [0], [1], [0, 0, 1, 1], [], []>} : vector<8x8xbf16>, vector<8x8xbf16>, vector<8x8xf32> -> vector<8x8xf32>
    %258 = tpu.reciprocal %255 {approx = true} : vector<8x1xf32> -> vector<8x1xf32>
    %259 = vector.broadcast %258 : vector<8x1xf32> to vector<8x8xf32>
    %260 = arith.mulf %257, %259 : vector<8x8xf32>
    %261 = arith.truncf %260 : vector<8x8xf32> to vector<8x8xbf16>
    %c3_124 = arith.constant 3 : index
    %c0_125 = arith.constant 0 : index
    %c0_126 = arith.constant 0 : index
    %262 = vector.load %arg3[%c3_124, %c0_125, %c0_126] : memref<4x8x32xbf16, #tpu.memory_space<vmem>>, vector<1x8x32xbf16>
    %263 = vector.shape_cast %262 : vector<1x8x32xbf16> to vector<8x32xbf16>
    %cst_127 = arith.constant dense<0.000000e+00> : vector<8x32xf32>
    %264 = tpu.matmul %261, %263, %cst_127 {dimension_numbers = #tpu.dot_dimension_numbers<[1], [0], [0], [1], [0, 0, 1, 1], [], []>} : vector<8x8xbf16>, vector<8x32xbf16>, vector<8x32xf32> -> vector<8x32xf32>
    %265 = arith.addf %239, %264 : vector<8x32xf32>
    %c0_128 = arith.constant 0 : index
    %c0_129 = arith.constant 0 : index
    %266 = vector.load %arg4[%c0_128, %c0_129] : memref<1x32xf32, #tpu.memory_space<vmem>>, vector<1x32xf32>
    %267 = vector.broadcast %266 : vector<1x32xf32> to vector<8x32xf32>
    %268 = arith.addf %265, %267 : vector<8x32xf32>
    %c8 = arith.constant 8 : index
    %c0_130 = arith.constant 0 : index
    %269 = vector.load %arg7[%c8, %c0_130] : memref<16x32xf32, #tpu.memory_space<vmem>>, vector<8x32xf32>
    tpu.vector_store %arg7[%c8, %c0_130], %268 {strides = array<i32>} : memref<16x32xf32, #tpu.memory_space<vmem>>, vector<8x32xf32>,
    return
  }
}

</mosaic_0001>

<bundles_post_ra>
// kernel: fused_prefill_attention.1
= control target key start
LH: loop header
LB: loop body
LE: loop exit
PB: predicated region body
PF: predicated region fallthrough
CT: control target
= control target key end

     0   :  { %v1777_v0 = vmov 0.0   ;;  %vm1778_vm0 = vmmov 0   ;;  %s2271_s0 = inlined_call_operand.vmem [shape: f32[16,32], index: 0, kind: input, shape index: {}]   ;;  %s2272_s1 = inlined_call_operand.vmem [shape: bf16[32,64], index: 1, kind: input, shape index: {}]   ;;  %s2273_s2 = inlined_call_operand.vmem [shape: f32[1,64], index: 2, kind: input, shape index: {}]   ;;  %s2274_s3 = inlined_call_operand.vmem [shape: bf16[4,8,32], index: 3, kind: input, shape index: {}]   ;;  %s2275_s4 = inlined_call_operand.vmem [shape: f32[1,32], index: 4, kind: input, shape index: {}]   ;;  %s2276_s5 = inlined_call_operand.vmem [shape: f32[2,2,16,8], index: 5, kind: input, shape index: {}, may-alias: {5,8}]   ;;  %s2277_s6 = inlined_call_operand.vmem [shape: f32[2,2,16,8], index: 6, kind: input, shape index: {}, may-alias: {6,9}]   ;;  %s2278_s7 = inlined_call_operand.hbm [shape: f32[16,32], index: 7, kind: output, shape index: {0}]   ;;  %s2279_s8 = inlined_call_operand.vmem [shape: f32[2,2,16,8], index: 8, kind: output, shape index: {1}, may-alias: {5,8}]   ;;  %s2280_s9 = inlined_call_operand.vmem [shape: f32[2,2,16,8], index: 9, kind: output, shape index: {2}, may-alias: {6,9}]  }
   0x1   :  { %1555 = vmatprep.subr.bf16.mxu0 %v1777_v0  ;;  %1559 = vmatprep.mubr.msk.bf16.mxu0 %vm1778_vm0, %v1777_v0  ;;  %v1719_v1 = vld [vmem:[%s2272_s1] sm:$0xff]   ;;  %v1720_v2 = vld [vmem:[%s2272_s1 + $0x8] sm:$0xff]  }
   0x2   :  { %1563 = vmatprep.subr.bf16.mxu1 %v1777_v0  ;;  %1565 = vmatprep.mubr.msk.bf16.mxu1 %vm1778_vm0, %v1777_v0  ;;  %v64_v3 = vld [vmem:[%s2271_s0] sm:$0xff]  ;;  %v65_v4 = vld [vmem:[%s2271_s0 + $0x8] sm:$0xff] }
   0x3   :  { %1556 = vmatpush3.bf16.msra.mxu0 %v1719_v1 }
   0x4   :  { %15 = vsyncpa [#allocation3], 0  ;;  %1557 = vmatprep.subr.bf16.mxu0 %v1777_v0  ;;  %v66_v5 = vpack.c.bf16 %v65_v4, %v64_v3  ;;  %vm90_vm1 = vcmask 261120   ;;  %v32_v6 = vld [vmem:[%s2276_s5 + $0x8] sm:$0xff]  ;;  %v34_v7 = vld [vmem:[%s2276_s5 + $0x18] sm:$0xff]  ;;  %vm39_vm2 = vcmask 64512   ;;  %v135_v27 = vlaneseq }
   0x5   :  { %v36_v8 = vld [vmem:[%s2276_s5 + $0x28] sm:$0xff]  ;;  %v38_v9 = vld [vmem:[%s2276_s5 + $0x38] sm:$0xff]  ;;  %v1462_v14 = vld [vmem:[%s2273_s2] ss:$0 sm:$0xff]  ;;  %s1779_s26 = smov 96   ;;  %s1780_s27 = smov 120  }
   0x6   :  { %v49_v10 = vld [vmem:[%s2277_s6 + $0x8] sm:$0xff]  ;;  %v51_v11 = vld [vmem:[%s2277_s6 + $0x18] sm:$0xff]  ;;  %41 = vst.msk [vmem:[%s2279_s8 + $0x8] sm:$0xff] %vm39_vm2, %v32_v6  ;;  %43 = vst.msk [vmem:[%s2279_s8 + $0x18] sm:$0xff] %vm39_vm2, %v34_v7  ;;  %s1781_s2 = smov 80   ;;  %s1782_s28 = smov 88  }
   0x7   :  { %1558 = vmatpush3.bf16.msra.mxu0 %v1720_v2  ;;  %v53_v12 = vld [vmem:[%s2277_s6 + $0x28] sm:$0xff]  ;;  %v55_v13 = vld [vmem:[%s2277_s6 + $0x38] sm:$0xff]  ;;  %45 = vst.msk [vmem:[%s2279_s8 + $0x28] sm:$0xff] %vm39_vm2, %v36_v8  ;;  %47 = vst.msk [vmem:[%s2279_s8 + $0x38] sm:$0xff] %vm39_vm2, %v38_v9  ;;  %vm225_vm3 = vcmask 1043456   ;;  %v136_v28 = vshrl.u32 %v135_v27, 7 }
   0x8   :  { %1569 = vmatprep.subr.bf16.mxu0 %v1777_v0  ;;  %57 = vst.msk [vmem:[%s2280_s9 + $0x8] sm:$0xff] %vm39_vm2, %v49_v10  ;;  %59 = vst.msk [vmem:[%s2280_s9 + $0x18] sm:$0xff] %vm39_vm2, %v51_v11  ;;  %v138_v29 = vand.u32 127, %v135_v27  ;;  %s1783_s29 = smov 72   ;;  %s1784_s30 = smov 112  }
   0x9   :  { %61 = vst.msk [vmem:[%s2280_s9 + $0x28] sm:$0xff] %vm39_vm2, %v53_v12  ;;  %63 = vst.msk [vmem:[%s2280_s9 + $0x38] sm:$0xff] %vm39_vm2, %v55_v13  ;;  %v272_v55 = vld [vmem:[%s2274_s3] sm:$0xf]  ;;  %v1472_v57 = vld [vmem:[%s2274_s3 + $0x4] sm:$0xf] }
   0xa   :  { %1560 = vmatmul.mubr.msk.bf16.vlgmr.msra.gmra.mrb[0].mxu0 %vm90_vm1, %v66_v5  ;;  %vm1949_vm4 = vcmp.le.s32.totalorder %v138_v29, %v136_v28  ;;  %v427_v56 = vsel %vm225_vm3, %v272_v55, 0  ;;  %v381_v58 = vsel %vm225_vm3, %v1472_v57, 0  ;;  %s1785_s14 = smov 104  }
   0xb   :  { %1571 = vmatprep.mubr.msk.bf16.mxu0 %vm1778_vm0, %v1777_v0 }
  0xdd   :  { %v128_v15 = vpop.f32.mrb[0].mxu0 }
  0xde   :  { %v1921_v16 = vadd.f32 %v1462_v14, %v128_v15  ;;  %v1561_v17 = vpop.f32.mrb[1].mxu0 }
  0xdf   :  { %v131_v18 = vpop.f32.mrb[2].mxu0 }
  0xe0   :  { %v1925_v19 = vpack.c.bf16 %v1921_v16, %v1921_v16  ;;  %v1927_v20 = vadd.f32 %v1462_v14, %v131_v18  ;;  %v1562_v21 = vpop.f32.mrb[3].mxu0 }
  0xe2   :  { %161 = vrot.lane.b32.xlu0 %v1925_v19, %s1779_s26 }
  0xe6   :  { %273 = vrot.lane.b32.xlu0 %v1925_v19, %s1780_s27 }
  0xea   :  { %220 = vrot.lane.b32.xlu0 %v1925_v19, %s1781_s2 }
  0xee   :  { %471 = vrot.lane.b32.xlu0 %v1925_v19, %s1782_s28 }
 0x154   :  { %v162_v22 = vpop.permute.xlu0 %161 }
 0x155   :  { %v167_v23 = vsel %vm39_vm2, %v162_v22, 0 }
 0x156   :  { %1564 = vmatpush3.bf16.xpose.msra.mxu1 %v167_v23 }
 0x157   :  { %1575 = vmatprep.subr.bf16.mxu1 %v1777_v0 }
 0x158   :  { %v274_v24 = vpop.permute.xlu0 %273 }
 0x15c   :  { %v221_v25 = vpop.permute.xlu0 %220 }
 0x15d   :  { %v227_v26 = vsel %vm225_vm3, %v221_v25, 0  ;;  %1566 = vmatmul.mubr.msk.bf16.vlgmr.msra.gmra.mrb[0].mxu1 %vm39_vm2, %v1925_v19 }
 0x15e   :  { %1570 = vmatpush3.bf16.msra.mxu0 %v227_v26  ;;  %1576 = vmatpush3.bf16.xpose.msra.mxu1 %v167_v23 }
 0x15f   :  { %1577 = vmatprep.mubr.msk.bf16.mxu1 %vm1778_vm0, %v1777_v0  ;;  %1581 = vmatprep.subr.bf16.mxu0 %v1777_v0 }
 0x160   :  { %1587 = vmatprep.subr.bf16.mxu1 %v1777_v0  ;;  %v472_v59 = vpop.permute.xlu0 %471 }
 0x161   :  { %v477_v15 = vsel %vm39_vm2, %v472_v59, 0 }
 0x165   :  { %1578 = vmatmul.mubr.msk.bf16.vlgmr.msra.gmra.mrb[4].mxu1 %vm39_vm2, %v274_v24 }
 0x166   :  { %1589 = vmatprep.mubr.msk.bf16.mxu1 %vm1778_vm0, %v1777_v0  ;;  %1588 = vmatpush3.bf16.msra.mxu1 %v381_v58 }
 0x167   :  { %1599 = vmatprep.subr.bf16.mxu1 %v1777_v0 }
 0x230   :  { %v203_v31 = vpop.f32.mrb[0].mxu1 }
 0x231   :  { %v209_v32 = vsel %vm1949_vm4, %v203_v31, -1e+30  ;;  %v1567_v33 = vpop.f32.mrb[1].mxu1 }
 0x232   :  { %v206_v34 = vpop.f32.mrb[2].mxu1  ;;  %v210_v35 = vsel %vm39_vm2, %v209_v32, -inf }
 0x233   :  { %211 = vmax.xlane.f32.xlu1 %v210_v35  ;;  %v1568_v36 = vpop.f32.mrb[3].mxu1 }
 0x238   :  { %v312_v37 = vpop.f32.mrb[4].mxu1 }
 0x239   :  { %v318_v38 = vsel %vm1949_vm4, %v312_v37, -1e+30  ;;  %v1579_v39 = vpop.f32.mrb[5].mxu1 }
 0x23a   :  { %v315_v40 = vpop.f32.mrb[6].mxu1  ;;  %v319_v41 = vsel %vm39_vm2, %v318_v38, -inf }
 0x23b   :  { %320 = vmax.xlane.f32.xlu1 %v319_v41  ;;  %v1580_v42 = vpop.f32.mrb[7].mxu1 }
 0x2c0   :  { %v212_v43 = vpop.xlane.xlu1 %211 }
 0x2c1   :  { %v213_v44 = vsub.f32 %v209_v32, %v212_v43  ;;  %v1477_v43 = vld [vmem:[%s2274_s3 + $0x8] sm:$0xf] }
 0x2c3   :  { %v214_v45 = vmul.f32 1.442695, %v213_v44  ;;  %v587_v44 = vsel %vm225_vm3, %v1477_v43, 0 }
 0x2c5   :  { %1721 = vpow2.f32 %v214_v45 }
 0x2c8   :  { %v321_v46 = vpop.xlane.xlu1 %320 }
 0x2c9   :  { %v322_v47 = vsub.f32 %v318_v38, %v321_v46 }
 0x2cb   :  { %v323_v48 = vmul.f32 1.442695, %v322_v47 }
 0x2cd   :  { %1723 = vpow2.f32 %v323_v48 }
 0x2cf   :  { %v1722_v49 = vpop.eup %1721 }
 0x2d0   :  { %v216_v50 = vsel %vm39_vm2, %v1722_v49, 0.0  ;;  %v219_v51 = vpack.c.bf16 %v1722_v49, %v1722_v49 }
 0x2d1   :  { %217 = vadd.xlane.f32.xlu0 %v216_v50 }
 0x2d2   :  { %1572 = vmatmul.mubr.msk.bf16.vlgmr.msra.gmra.mrb[4].mxu0 %vm39_vm2, %v219_v51 }
 0x2d3   :  { %1582 = vmatpush3.bf16.msra.mxu0 %v227_v26  ;;  %1583 = vmatprep.mubr.msk.bf16.mxu0 %vm1778_vm0, %v1777_v0 }
 0x2d4   :  { %1593 = vmatprep.subr.bf16.mxu0 %v1777_v0 }
 0x2d7   :  { %v1724_v52 = vpop.eup %1723 }
 0x2d8   :  { %v325_v53 = vsel %vm39_vm2, %v1724_v52, 0.0  ;;  %v328_v54 = vpack.c.bf16 %v1724_v52, %v1724_v52 }
 0x2d9   :  { %326 = vadd.xlane.f32.xlu1 %v325_v53 }
 0x2da   :  { %1584 = vmatmul.mubr.msk.bf16.vlgmr.msra.gmra.mrb[8].mxu0 %vm39_vm2, %v328_v54 }
 0x2db   :  { %1595 = vmatprep.mubr.msk.bf16.mxu0 %vm1778_vm0, %v1777_v0  ;;  %1594 = vmatpush3.bf16.msra.mxu0 %v427_v56 }
 0x2dc   :  { %1605 = vmatprep.subr.bf16.mxu0 %v1777_v0 }
 0x2e7   :  { %530 = vrot.lane.b32.xlu0 %v1925_v19, %s1783_s29 }
 0x2ea   :  { %469 = vrot.lane.b32.xlu1 %v1925_v19, %s1784_s30 }
 0x35e   :  { %v218_v60 = vpop.xlane.xlu0 %217 }
 0x35f   :  { %1725 = vrcp.f32 %v218_v60 }
 0x362   :  { %v531_v3 = vpop.permute.xlu0 %530 }
 0x363   :  { %v1983_v7 = vsel %vm225_vm3, %v531_v3, 0 }
 0x366   :  { %v327_v61 = vpop.xlane.xlu1 %326 }
 0x367   :  { %1727 = vrcp.f32 %v327_v61 }
 0x369   :  { %v1726_v62 = vpop.eup %1725 }
 0x36a   :  { %v470_v17 = vpop.permute.xlu1 %469 }
 0x371   :  { %v1728_v8 = vpop.eup %1727 }
 0x3a5   :  { %v263_v63 = vpop.f32.mrb[4].mxu0 }
 0x3a6   :  { %v270_v1 = vmul.f32 %v1726_v62, %v263_v63  ;;  %v1573_v2 = vpop.f32.mrb[5].mxu0 }
 0x3a7   :  { %v266_v4 = vpop.f32.mrb[6].mxu0 }
 0x3a8   :  { %v271_v5 = vpack.c.bf16 %v270_v1, %v270_v1  ;;  %v1574_v6 = vpop.f32.mrb[7].mxu0 }
 0x3aa   :  { %1596 = vmatmul.mubr.msk.bf16.vlgmr.msra.gmra.mrb[12].mxu0 %vm39_vm2, %v271_v5 }
 0x3ab   :  { %1606 = vmatpush3.bf16.msra.mxu0 %v1983_v7  ;;  %1607 = vmatprep.mubr.msk.bf16.mxu0 %vm1778_vm0, %v1777_v0 }
 0x3ac   :  { %1617 = vmatprep.subr.bf16.mxu0 %v1777_v0 }
 0x3ad   :  { %v366_v9 = vpop.f32.mrb[8].mxu0 }
 0x3ae   :  { %v373_v10 = vmul.f32 %v1728_v8, %v366_v9  ;;  %v1585_v11 = vpop.f32.mrb[9].mxu0 }
 0x3af   :  { %v369_v12 = vpop.f32.mrb[10].mxu0 }
 0x3b0   :  { %v374_v13 = vpack.c.bf16 %v373_v10, %v373_v10  ;;  %v1586_v14 = vpop.f32.mrb[11].mxu0  ;;  %v1481_v10 = vld [vmem:[%s2274_s3 + $0xc] sm:$0xf] }
 0x3b1   :  { %v738_v11 = vsel %vm225_vm3, %v1481_v10, 0 }
 0x3b2   :  { %1590 = vmatmul.mubr.msk.bf16.vlgmr.msra.gmra.mrb[8].mxu1 %vm39_vm2, %v374_v13 }
 0x3b3   :  { %1600 = vmatpush3.bf16.xpose.msra.mxu1 %v477_v15  ;;  %1601 = vmatprep.mubr.msk.bf16.mxu1 %vm1778_vm0, %v1777_v0 }
 0x3b4   :  { %1611 = vmatprep.subr.bf16.mxu1 %v1777_v0 }
 0x3ba   :  { %1602 = vmatmul.mubr.msk.bf16.vlgmr.msra.gmra.mrb[12].mxu1 %vm39_vm2, %v470_v17 }
 0x3bb   :  { %1613 = vmatprep.mubr.msk.bf16.mxu1 %vm1778_vm0, %v1777_v0  ;;  %1612 = vmatpush3.bf16.msra.mxu1 %v587_v44 }
 0x3bc   :  { %1623 = vmatprep.subr.bf16.mxu1 %v1777_v0 }
 0x47d   :  { %v463_v18 = vpop.f32.mrb[12].mxu0 }
 0x47e   :  { %v1597_v21 = vpop.f32.mrb[13].mxu0 }
 0x47f   :  { %v466_v22 = vpop.f32.mrb[14].mxu0 }
 0x480   :  { %v1598_v23 = vpop.f32.mrb[15].mxu0 }
 0x485   :  { %v417_v24 = vpop.f32.mrb[8].mxu1 }
 0x486   :  { %v1998_v25 = vadd.f32 %v463_v18, %v417_v24  ;;  %v1591_v26 = vpop.f32.mrb[9].mxu1 }
 0x487   :  { %v420_v27 = vpop.f32.mrb[10].mxu1 }
 0x488   :  { %v1592_v28 = vpop.f32.mrb[11].mxu1 }
 0x48d   :  { %v513_v29 = vpop.f32.mrb[12].mxu1 }
 0x48e   :  { %v519_v31 = vsel %vm1949_vm4, %v513_v29, -1e+30  ;;  %v1603_v32 = vpop.f32.mrb[13].mxu1 }
 0x48f   :  { %v516_v33 = vpop.f32.mrb[14].mxu1  ;;  %v520_v34 = vsel %vm39_vm2, %v519_v31, -inf }
 0x490   :  { %521 = vmax.xlane.f32.xlu1 %v520_v34  ;;  %v1604_v35 = vpop.f32.mrb[15].mxu1 }
 0x4a1   :  { %630 = vrot.lane.b32.xlu1 %v1925_v19, %s1785_s14  ;;  %v2015_v19 = vpack.c.bf16 %v1927_v20, %v1927_v20 }
 0x51d   :  { %v522_v36 = vpop.xlane.xlu1 %521 }
 0x51e   :  { %v523_v37 = vsub.f32 %v519_v31, %v522_v36 }
 0x520   :  { %v524_v38 = vmul.f32 1.442695, %v523_v37 }
 0x521   :  { %v631_v42 = vpop.permute.xlu1 %630 }
 0x522   :  { %1729 = vpow2.f32 %v524_v38 }
 0x52c   :  { %v1730_v39 = vpop.eup %1729 }
 0x52d   :  { %v526_v40 = vsel %vm39_vm2, %v1730_v39, 0.0  ;;  %v529_v41 = vpack.c.bf16 %v1730_v39, %v1730_v39 }
 0x52e   :  { %527 = vadd.xlane.f32.xlu0 %v526_v40 }
 0x52f   :  { %1608 = vmatmul.mubr.msk.bf16.vlgmr.msra.gmra.mrb[16].mxu0 %vm39_vm2, %v529_v41 }
 0x530   :  { %1618 = vmatpush3.bf16.xpose.msra.mxu0 %v477_v15  ;;  %1619 = vmatprep.mubr.msk.bf16.mxu0 %vm1778_vm0, %v1777_v0 }
 0x531   :  { %1629 = vmatprep.subr.bf16.mxu0 %v1777_v0 }
 0x537   :  { %1620 = vmatmul.mubr.msk.bf16.vlgmr.msra.gmra.mrb[20].mxu0 %vm39_vm2, %v631_v42 }
 0x538   :  { %1631 = vmatprep.mubr.msk.bf16.mxu0 %vm1778_vm0, %v1777_v0  ;;  %1630 = vmatpush3.bf16.msra.mxu0 %v738_v11 }
 0x539   :  { %1641 = vmatprep.subr.bf16.mxu0 %v1777_v0 }
 0x544   :  { %813 = vrot.lane.b32.xlu0 %v2015_v19, %s1779_s26 }
 0x5bb   :  { %v528_v45 = vpop.xlane.xlu0 %527 }
 0x5bc   :  { %1731 = vrcp.f32 %v528_v45 }
 0x5bf   :  { %v814_v63 = vpop.permute.xlu0 %813 }
 0x5c0   :  { %v819_v3 = vsel %vm39_vm2, %v814_v63, 0 }
 0x5c6   :  { %v1732_v46 = vpop.eup %1731 }
 0x602   :  { %v572_v47 = vpop.f32.mrb[16].mxu0 }
 0x603   :  { %v579_v48 = vmul.f32 %v1732_v46, %v572_v47  ;;  %v1609_v49 = vpop.f32.mrb[17].mxu0 }
 0x604   :  { %v575_v50 = vpop.f32.mrb[18].mxu0 }
 0x605   :  { %v580_v51 = vpack.c.bf16 %v579_v48, %v579_v48  ;;  %v1610_v52 = vpop.f32.mrb[19].mxu0 }
 0x607   :  { %1614 = vmatmul.mubr.msk.bf16.vlgmr.msra.gmra.mrb[16].mxu1 %vm39_vm2, %v580_v51  ;;  %v2087_v51 = vld [vmem:[%s2275_s4] ss:$0 sm:$0xff] }
 0x608   :  { %1624 = vmatpush3.bf16.msra.mxu1 %v1983_v7  ;;  %1625 = vmatprep.mubr.msk.bf16.mxu1 %vm1778_vm0, %v1777_v0 }
 0x609   :  { %1635 = vmatprep.subr.bf16.mxu1 %v1777_v0 }
 0x60a   :  { %v669_v53 = vpop.f32.mrb[20].mxu0 }
 0x60b   :  { %v675_v54 = vsel %vm1949_vm4, %v669_v53, -1e+30  ;;  %v1621_v55 = vpop.f32.mrb[21].mxu0 }
 0x60c   :  { %v672_v56 = vpop.f32.mrb[22].mxu0  ;;  %v676_v57 = vsel %vm39_vm2, %v675_v54, -inf }
 0x60d   :  { %677 = vmax.xlane.f32.xlu1 %v676_v57  ;;  %v1622_v58 = vpop.f32.mrb[23].mxu0  ;;  %v923_v57 = vld [vmem:[%s2274_s3] sm:$0xf] }
 0x60e   :  { %v1077_v58 = vsel %vm225_vm3, %v923_v57, 0 }
 0x61e   :  { %924 = vrot.lane.b32.xlu1 %v2015_v19, %s1780_s27 }
 0x69a   :  { %v678_v59 = vpop.xlane.xlu1 %677 }
 0x69b   :  { %v679_v60 = vsub.f32 %v675_v54, %v678_v59  ;;  %v1492_v59 = vld [vmem:[%s2274_s3 + $0x4] sm:$0xf] }
 0x69d   :  { %v680_v61 = vmul.f32 1.442695, %v679_v60  ;;  %v1031_v60 = vsel %vm225_vm3, %v1492_v59, 0 }
 0x69e   :  { %v925_v4 = vpop.permute.xlu1 %924 }
 0x69f   :  { %1733 = vpow2.f32 %v680_v61 }
 0x6a9   :  { %v1734_v62 = vpop.eup %1733 }
 0x6aa   :  { %v682_v1 = vsel %vm39_vm2, %v1734_v62, 0.0  ;;  %v685_v2 = vpack.c.bf16 %v1734_v62, %v1734_v62 }
 0x6ab   :  { %683 = vadd.xlane.f32.xlu0 %v682_v1 }
 0x6ac   :  { %1626 = vmatmul.mubr.msk.bf16.vlgmr.msra.gmra.mrb[20].mxu1 %vm39_vm2, %v685_v2 }
 0x6ad   :  { %1636 = vmatpush3.bf16.xpose.msra.mxu1 %v819_v3  ;;  %1637 = vmatprep.mubr.msk.bf16.mxu1 %vm1778_vm0, %v1777_v0 }
 0x6ae   :  { %1647 = vmatprep.subr.bf16.mxu1 %v1777_v0 }
 0x6b4   :  { %1638 = vmatmul.mubr.msk.bf16.vlgmr.msra.gmra.mrb[24].mxu1 %vm39_vm2, %v2015_v19 }
 0x6b5   :  { %1648 = vmatpush3.bf16.xpose.msra.mxu1 %v819_v3  ;;  %1649 = vmatprep.mubr.msk.bf16.mxu1 %vm1778_vm0, %v1777_v0 }
 0x6b6   :  { %1659 = vmatprep.subr.bf16.mxu1 %v1777_v0 }
 0x6bc   :  { %1650 = vmatmul.mubr.msk.bf16.vlgmr.msra.gmra.mrb[28].mxu1 %vm39_vm2, %v925_v4 }
 0x6bd   :  { %1661 = vmatprep.mubr.msk.bf16.mxu1 %vm1778_vm0, %v1777_v0  ;;  %1660 = vmatpush3.bf16.msra.mxu1 %v1031_v60 }
 0x6be   :  { %1671 = vmatprep.subr.bf16.mxu1 %v1777_v0 }
 0x6da   :  { %v623_v5 = vpop.f32.mrb[16].mxu1 }
 0x6db   :  { %v2049_v6 = vadd.f32 %v623_v5, %v1998_v25  ;;  %v1615_v7 = vpop.f32.mrb[17].mxu1 }
 0x6dc   :  { %v626_v8 = vpop.f32.mrb[18].mxu1 }
 0x6dd   :  { %v1616_v9 = vpop.f32.mrb[19].mxu1 }
 0x738   :  { %v684_v12 = vpop.xlane.xlu0 %683 }
 0x739   :  { %1735 = vrcp.f32 %v684_v12 }
 0x743   :  { %v1736_v13 = vpop.eup %1735 }
 0x77f   :  { %v723_v14 = vpop.f32.mrb[20].mxu1 }
 0x780   :  { %v730_v15 = vmul.f32 %v1736_v13, %v723_v14  ;;  %v1627_v17 = vpop.f32.mrb[21].mxu1 }
 0x781   :  { %v726_v18 = vpop.f32.mrb[22].mxu1 }
 0x782   :  { %v731_v21 = vpack.c.bf16 %v730_v15, %v730_v15  ;;  %v1628_v22 = vpop.f32.mrb[23].mxu1 }
 0x784   :  { %1632 = vmatmul.mubr.msk.bf16.vlgmr.msra.gmra.mrb[24].mxu0 %vm39_vm2, %v731_v21 }
 0x785   :  { %1643 = vmatprep.mubr.msk.bf16.mxu0 %vm1778_vm0, %v1777_v0 }
 0x787   :  { %v855_v23 = vpop.f32.mrb[24].mxu1 }
 0x788   :  { %v861_v24 = vsel %vm1949_vm4, %v855_v23, -1e+30  ;;  %v1639_v25 = vpop.f32.mrb[25].mxu1 }
 0x789   :  { %v858_v26 = vpop.f32.mrb[26].mxu1  ;;  %v862_v27 = vsel %vm39_vm2, %v861_v24, -inf }
 0x78a   :  { %863 = vmax.xlane.f32.xlu1 %v862_v27  ;;  %v1640_v28 = vpop.f32.mrb[27].mxu1 }
 0x78f   :  { %v963_v29 = vpop.f32.mrb[28].mxu1 }
 0x790   :  { %v969_v31 = vsel %vm1949_vm4, %v963_v29, -1e+30  ;;  %v1651_v32 = vpop.f32.mrb[29].mxu1 }
 0x791   :  { %v966_v33 = vpop.f32.mrb[30].mxu1  ;;  %v970_v34 = vsel %vm39_vm2, %v969_v31, -inf }
 0x792   :  { %971 = vmax.xlane.f32.xlu0 %v970_v34  ;;  %v1652_v35 = vpop.f32.mrb[31].mxu1 }
 0x7a8   :  { %872 = vrot.lane.b32.xlu0 %v2015_v19, %s1781_s2 }
 0x7ac   :  { %1119 = vrot.lane.b32.xlu0 %v2015_v19, %s1784_s30 }
 0x817   :  { %v864_v36 = vpop.xlane.xlu1 %863 }
 0x818   :  { %v865_v37 = vsub.f32 %v861_v24, %v864_v36 }
 0x81a   :  { %v866_v38 = vmul.f32 1.442695, %v865_v37 }
 0x81c   :  { %1737 = vpow2.f32 %v866_v38 }
 0x81f   :  { %v972_v39 = vpop.xlane.xlu0 %971 }
 0x820   :  { %v973_v40 = vsub.f32 %v969_v31, %v972_v39 }
 0x822   :  { %v974_v41 = vmul.f32 1.442695, %v973_v40 }
 0x823   :  { %v873_v42 = vpop.permute.xlu0 %872 }
 0x824   :  { %1739 = vpow2.f32 %v974_v41  ;;  %v878_v43 = vsel %vm225_vm3, %v873_v42, 0 }
 0x825   :  { %1642 = vmatpush3.bf16.msra.mxu0 %v878_v43 }
 0x826   :  { %v1738_v44 = vpop.eup %1737  ;;  %1653 = vmatprep.subr.bf16.mxu0 %v1777_v0 }
 0x827   :  { %v868_v45 = vsel %vm39_vm2, %v1738_v44, 0.0  ;;  %v871_v46 = vpack.c.bf16 %v1738_v44, %v1738_v44  ;;  %v1120_v61 = vpop.permute.xlu0 %1119 }
 0x828   :  { %869 = vadd.xlane.f32.xlu0 %v868_v45 }
 0x829   :  { %1644 = vmatmul.mubr.msk.bf16.vlgmr.msra.gmra.mrb[28].mxu0 %vm39_vm2, %v871_v46 }
 0x82a   :  { %1654 = vmatpush3.bf16.msra.mxu0 %v878_v43  ;;  %1655 = vmatprep.mubr.msk.bf16.mxu0 %vm1778_vm0, %v1777_v0 }
 0x82b   :  { %1665 = vmatprep.subr.bf16.mxu0 %v1777_v0 }
 0x82e   :  { %v1740_v47 = vpop.eup %1739 }
 0x82f   :  { %v976_v48 = vsel %vm39_vm2, %v1740_v47, 0.0  ;;  %v979_v49 = vpack.c.bf16 %v1740_v47, %v1740_v47 }
 0x830   :  { %977 = vadd.xlane.f32.xlu1 %v976_v48 }
 0x831   :  { %1656 = vmatmul.mubr.msk.bf16.vlgmr.msra.gmra.mrb[32].mxu0 %vm39_vm2, %v979_v49 }
 0x832   :  { %1667 = vmatprep.mubr.msk.bf16.mxu0 %vm1778_vm0, %v1777_v0  ;;  %1666 = vmatpush3.bf16.msra.mxu0 %v1077_v58 }
 0x833   :  { %1677 = vmatprep.subr.bf16.mxu0 %v1777_v0 }
 0x83e   :  { %1180 = vrot.lane.b32.xlu0 %v2015_v19, %s1783_s29 }
 0x841   :  { %1121 = vrot.lane.b32.xlu1 %v2015_v19, %s1782_s28 }
 0x857   :  { %v774_v50 = vpop.f32.mrb[24].mxu0 }
 0x858   :  { %v780_v52 = vadd.f32 %v774_v50, %v2049_v6  ;;  %v1633_v53 = vpop.f32.mrb[25].mxu0 }
 0x859   :  { %v777_v54 = vpop.f32.mrb[26].mxu0 }
 0x85a   :  { %v788_v55 = vadd.f32 %v2087_v51, %v780_v52  ;;  %v1634_v56 = vpop.f32.mrb[27].mxu0 }
 0x85c   :  { %789 = vst.msk [vmem:[#allocation2] sm:$0xff] %vm90_vm1, %v788_v55 }
 0x8b5   :  { %v870_v62 = vpop.xlane.xlu0 %869 }
 0x8b6   :  { %1741 = vrcp.f32 %v870_v62 }
 0x8b9   :  { %v1181_v5 = vpop.permute.xlu0 %1180 }
 0x8ba   :  { %v2103_v9 = vsel %vm225_vm3, %v1181_v5, 0 }
 0x8bd   :  { %v978_v63 = vpop.xlane.xlu1 %977 }
 0x8be   :  { %1743 = vrcp.f32 %v978_v63 }
 0x8c0   :  { %v1742_v1 = vpop.eup %1741 }
 0x8c1   :  { %v1122_v14 = vpop.permute.xlu1 %1121 }
 0x8c2   :  { %v1127_v21 = vsel %vm39_vm2, %v1122_v14, 0 }
 0x8c8   :  { %v1744_v10 = vpop.eup %1743 }
 0x8fc   :  { %v914_v2 = vpop.f32.mrb[28].mxu0 }
 0x8fd   :  { %v921_v3 = vmul.f32 %v1742_v1, %v914_v2  ;;  %v1645_v4 = vpop.f32.mrb[29].mxu0 }
 0x8fe   :  { %v917_v6 = vpop.f32.mrb[30].mxu0 }
 0x8ff   :  { %v922_v7 = vpack.c.bf16 %v921_v3, %v921_v3  ;;  %v1646_v8 = vpop.f32.mrb[31].mxu0 }
 0x901   :  { %1668 = vmatmul.mubr.msk.bf16.vlgmr.msra.gmra.mrb[36].mxu0 %vm39_vm2, %v922_v7 }
 0x902   :  { %1678 = vmatpush3.bf16.msra.mxu0 %v2103_v9  ;;  %1679 = vmatprep.mubr.msk.bf16.mxu0 %vm1778_vm0, %v1777_v0 }
 0x903   :  { %1689 = vmatprep.subr.bf16.mxu0 %v1777_v0 }
 0x904   :  { %v1017_v11 = vpop.f32.mrb[32].mxu0 }
 0x905   :  { %v1024_v12 = vmul.f32 %v1744_v10, %v1017_v11  ;;  %v1657_v13 = vpop.f32.mrb[33].mxu0 }
 0x906   :  { %v1020_v15 = vpop.f32.mrb[34].mxu0 }
 0x907   :  { %v1025_v17 = vpack.c.bf16 %v1024_v12, %v1024_v12  ;;  %v1658_v18 = vpop.f32.mrb[35].mxu0 }
 0x908   :  { %v1501_v18 = vld [vmem:[%s2274_s3 + $0xc] sm:$0xf] }
 0x909   :  { %1662 = vmatmul.mubr.msk.bf16.vlgmr.msra.gmra.mrb[32].mxu1 %vm39_vm2, %v1025_v17 }
 0x90a   :  { %1672 = vmatpush3.bf16.xpose.msra.mxu1 %v1127_v21  ;;  %1673 = vmatprep.mubr.msk.bf16.mxu1 %vm1778_vm0, %v1777_v0 }
 0x90b   :  { %1683 = vmatprep.subr.bf16.mxu1 %v1777_v0 }
 0x911   :  { %1674 = vmatmul.mubr.msk.bf16.vlgmr.msra.gmra.mrb[36].mxu1 %vm39_vm2, %v1120_v61  ;;  %v48_v61 = vld [vmem:[%s2277_s6] sm:$0xff] }
 0x912   :  { %1685 = vmatprep.mubr.msk.bf16.mxu1 %vm1778_vm0, %v1777_v0  ;;  %56 = vst.msk [vmem:[%s2280_s9] sm:$0xff] %vm39_vm2, %v48_v61 }
 0x9d4   :  { %v1113_v22 = vpop.f32.mrb[36].mxu0 }
 0x9d5   :  { %v1669_v23 = vpop.f32.mrb[37].mxu0 }
 0x9d6   :  { %v1116_v24 = vpop.f32.mrb[38].mxu0 }
 0x9d7   :  { %v1670_v25 = vpop.f32.mrb[39].mxu0 }
 0x9dc   :  { %v1067_v26 = vpop.f32.mrb[32].mxu1 }
 0x9dd   :  { %v2118_v27 = vadd.f32 %v1113_v22, %v1067_v26  ;;  %v1663_v28 = vpop.f32.mrb[33].mxu1 }
 0x9de   :  { %v1070_v29 = vpop.f32.mrb[34].mxu1 }
 0x9df   :  { %v1664_v31 = vpop.f32.mrb[35].mxu1 }
 0x9e4   :  { %v1163_v32 = vpop.f32.mrb[36].mxu1 }
 0x9e5   :  { %v1169_v33 = vsel %vm1949_vm4, %v1163_v32, -1e+30  ;;  %v1675_v34 = vpop.f32.mrb[37].mxu1 }
 0x9e6   :  { %v1166_v35 = vpop.f32.mrb[38].mxu1  ;;  %v1170_v36 = vsel %vm39_vm2, %v1169_v33, -inf }
 0x9e7   :  { %1171 = vmax.xlane.f32.xlu1 %v1170_v36  ;;  %v1676_v37 = vpop.f32.mrb[39].mxu1 }
 0x9f8   :  { %1279 = vrot.lane.b32.xlu1 %v2015_v19, %s1785_s14  ;;  %v1497_v19 = vld [vmem:[%s2274_s3 + $0x8] sm:$0xf] }
 0x9f9   :  { %v1236_v45 = vsel %vm225_vm3, %v1497_v19, 0 }
 0x9fa   :  { %1684 = vmatpush3.bf16.msra.mxu1 %v1236_v45 }
 0x9fb   :  { %1695 = vmatprep.subr.bf16.mxu1 %v1777_v0 }
 0xa74   :  { %v1172_v38 = vpop.xlane.xlu1 %1171 }
 0xa75   :  { %v1173_v39 = vsub.f32 %v1169_v33, %v1172_v38 }
 0xa77   :  { %v1174_v40 = vmul.f32 1.442695, %v1173_v39 }
 0xa78   :  { %v1280_v44 = vpop.permute.xlu1 %1279 }
 0xa79   :  { %1745 = vpow2.f32 %v1174_v40 }
 0xa83   :  { %v1746_v41 = vpop.eup %1745 }
 0xa84   :  { %v1176_v42 = vsel %vm39_vm2, %v1746_v41, 0.0  ;;  %v1179_v43 = vpack.c.bf16 %v1746_v41, %v1746_v41 }
 0xa85   :  { %1177 = vadd.xlane.f32.xlu0 %v1176_v42 }
 0xa86   :  { %1680 = vmatmul.mubr.msk.bf16.vlgmr.msra.gmra.mrb[40].mxu0 %vm39_vm2, %v1179_v43 }
 0xa87   :  { %1690 = vmatpush3.bf16.xpose.msra.mxu0 %v1127_v21  ;;  %1691 = vmatprep.mubr.msk.bf16.mxu0 %vm1778_vm0, %v1777_v0  ;;  %v1386_v21 = vsel %vm225_vm3, %v1501_v18, 0 }
 0xa88   :  { %1701 = vmatprep.subr.bf16.mxu0 %v1777_v0 }
 0xa8e   :  { %1692 = vmatmul.mubr.msk.bf16.vlgmr.msra.gmra.mrb[44].mxu0 %vm39_vm2, %v1280_v44 }
 0xa8f   :  { %1703 = vmatprep.mubr.msk.bf16.mxu0 %vm1778_vm0, %v1777_v0  ;;  %1702 = vmatpush3.bf16.msra.mxu0 %v1386_v21 }
 0xb12   :  { %v1178_v46 = vpop.xlane.xlu0 %1177 }
 0xb13   :  { %1747 = vrcp.f32 %v1178_v46 }
 0xb1d   :  { %v1748_v47 = vpop.eup %1747 }
 0xb59   :  { %v1222_v48 = vpop.f32.mrb[40].mxu0 }
 0xb5a   :  { %v1229_v49 = vmul.f32 %v1748_v47, %v1222_v48  ;;  %v1681_v50 = vpop.f32.mrb[41].mxu0 }
 0xb5b   :  { %v1225_v52 = vpop.f32.mrb[42].mxu0 }
 0xb5c   :  { %v1230_v53 = vpack.c.bf16 %v1229_v49, %v1229_v49  ;;  %v1682_v54 = vpop.f32.mrb[43].mxu0 }
 0xb5e   :  { %1686 = vmatmul.mubr.msk.bf16.vlgmr.msra.gmra.mrb[40].mxu1 %vm39_vm2, %v1230_v53 }
 0xb5f   :  { %1696 = vmatpush3.bf16.msra.mxu1 %v2103_v9  ;;  %1697 = vmatprep.mubr.msk.bf16.mxu1 %vm1778_vm0, %v1777_v0  ;;  %v35_v0 = vld [vmem:[%s2276_s5 + $0x20] sm:$0xff] }
 0xb60   :  { %44 = vst.msk [vmem:[%s2279_s8 + $0x20] sm:$0xff] %vm39_vm2, %v35_v0 }
 0xb61   :  { %v1318_v55 = vpop.f32.mrb[44].mxu0 }
 0xb62   :  { %v1324_v56 = vsel %vm1949_vm4, %v1318_v55, -1e+30  ;;  %v1693_v57 = vpop.f32.mrb[45].mxu0 }
 0xb63   :  { %v1321_v58 = vpop.f32.mrb[46].mxu0  ;;  %v1325_v59 = vsel %vm39_vm2, %v1324_v56, -inf }
 0xb64   :  { %1326 = vmax.xlane.f32.xlu1 %v1325_v59  ;;  %v1694_v60 = vpop.f32.mrb[47].mxu0 }
 0xb67   :  { %v37_v30 = vld [vmem:[%s2276_s5 + $0x30] sm:$0xff] }
 0xb68   :  { %46 = vst.msk [vmem:[%s2279_s8 + $0x30] sm:$0xff] %vm39_vm2, %v37_v30 }
 0xb75   :  { %145 = vrot.lane.b32.xlu1 %v1921_v16, %s1781_s2 }
 0xb79   :  { %791 = vrot.lane.b32.xlu1 %v1927_v20, %s1779_s26 }
 0xb7d   :  { %801 = vrot.lane.b32.xlu1 %v1927_v20, %s1782_s28 }
 0xbf1   :  { %v1327_v62 = vpop.xlane.xlu1 %1326 }
 0xbf2   :  { %v1328_v63 = vsub.f32 %v1324_v56, %v1327_v62 }
 0xbf4   :  { %v1329_v1 = vmul.f32 1.442695, %v1328_v63 }
 0xbf5   :  { %v146_v2 = vpop.permute.xlu1 %145 }
 0xbf6   :  { %1749 = vpow2.f32 %v1329_v1  ;;  %148 = vst.msk [vmem:[%s2280_s9] sm:$0xff] %vm39_vm2, %v146_v2 }
 0xbf9   :  { %v792_v3 = vpop.permute.xlu1 %791 }
 0xbfa   :  { %1484 = vst.msk [vmem:[%s2279_s8 + $0x20] sm:$0xff] %vm39_vm2, %v792_v3 }
 0xbfd   :  { %v802_v4 = vpop.permute.xlu1 %801  ;;  %v50_v10 = vld [vmem:[%s2277_s6 + $0x10] sm:$0xff] }
 0xbfe   :  { %1486 = vst.msk [vmem:[%s2279_s8 + $0x30] sm:$0xff] %vm39_vm2, %v802_v4  ;;  %58 = vst.msk [vmem:[%s2280_s9 + $0x10] sm:$0xff] %vm39_vm2, %v50_v10 }
 0xc00   :  { %v1750_v5 = vpop.eup %1749 }
 0xc01   :  { %v1331_v6 = vsel %vm39_vm2, %v1750_v5, 0.0  ;;  %v1334_v7 = vpack.c.bf16 %v1750_v5, %v1750_v5 }
 0xc02   :  { %1332 = vadd.xlane.f32.xlu0 %v1331_v6 }
 0xc03   :  { %1698 = vmatmul.mubr.msk.bf16.vlgmr.msra.gmra.mrb[44].mxu1 %vm39_vm2, %v1334_v7 }
 0xc05   :  { %v31_v8 = vld [vmem:[%s2276_s5] sm:$0xff] }
 0xc06   :  { %40 = vst.msk [vmem:[%s2279_s8] sm:$0xff] %vm39_vm2, %v31_v8  ;;  %v52_v11 = vld [vmem:[%s2277_s6 + $0x20] sm:$0xff] }
 0xc07   :  { %60 = vst.msk [vmem:[%s2280_s9 + $0x20] sm:$0xff] %vm39_vm2, %v52_v11 }
 0xc0d   :  { %v33_v9 = vld [vmem:[%s2276_s5 + $0x10] sm:$0xff] }
 0xc0e   :  { %42 = vst.msk [vmem:[%s2279_s8 + $0x10] sm:$0xff] %vm39_vm2, %v33_v9  ;;  %v54_v12 = vld [vmem:[%s2277_s6 + $0x30] sm:$0xff] }
 0xc0f   :  { %62 = vst.msk [vmem:[%s2280_s9 + $0x30] sm:$0xff] %vm39_vm2, %v54_v12 }
 0xc18   :  { %141 = vrot.lane.b32.xlu0 %v1921_v16, %s1779_s26 }
 0xc1c   :  { %149 = vrot.lane.b32.xlu0 %v1921_v16, %s1782_s28 }
 0xc20   :  { %154 = vrot.lane.b32.xlu0 %v1921_v16, %s1783_s29 }
 0xc24   :  { %796 = vrot.lane.b32.xlu0 %v1927_v20, %s1781_s2 }
 0xc28   :  { %806 = vrot.lane.b32.xlu0 %v1927_v20, %s1783_s29 }
 0xc31   :  { %v1272_v13 = vpop.f32.mrb[40].mxu1 }
 0xc32   :  { %v1278_v14 = vadd.f32 %v1272_v13, %v2118_v27  ;;  %v1687_v15 = vpop.f32.mrb[41].mxu1 }
 0xc33   :  { %v1275_v16 = vpop.f32.mrb[42].mxu1 }
 0xc34   :  { %v1688_v17 = vpop.f32.mrb[43].mxu1 }
 0xc8f   :  { %v1333_v22 = vpop.xlane.xlu0 %1332 }
 0xc90   :  { %1751 = vrcp.f32 %v1333_v22 }
 0xc93   :  { %v142_v23 = vpop.permute.xlu0 %141 }
 0xc94   :  { %144 = vst.msk [vmem:[%s2279_s8] sm:$0xff] %vm39_vm2, %v142_v23 }
 0xc97   :  { %v150_v20 = vpop.permute.xlu0 %149 }
 0xc98   :  { %1466 = vst.msk [vmem:[%s2279_s8 + $0x10] sm:$0xff] %vm39_vm2, %v150_v20  ;;  %s1786_s8 = smov [#allocation2]  }
 0xc99   :  { %s1443_s25 = sshll.u32 %s1786_s8, 4  ;;  %s1444_s25 = int_to_ptr.vmem [resolvable:$true] %s1443_s25 }
 0xc9a   :  { %v1752_v27 = vpop.eup %1751  ;;  %p1758_p1 = scmp.lt.s32.totalorder %s1444_s25, %s1444_s25 }
 0xc9b   :  { %v155_v24 = vpop.permute.xlu0 %154 }
 0xc9c   :  { %1467 = vst.msk [vmem:[%s2280_s9 + $0x10] sm:$0xff] %vm39_vm2, %v155_v24 }
 0xc9f   :  { %v797_v25 = vpop.permute.xlu0 %796 }
 0xca0   :  { %1485 = vst.msk [vmem:[%s2280_s9 + $0x20] sm:$0xff] %vm39_vm2, %v797_v25 }
 0xca3   :  { %v807_v26 = vpop.permute.xlu0 %806 }
 0xca4   :  { %1487 = vst.msk [vmem:[%s2280_s9 + $0x30] sm:$0xff] %vm39_vm2, %v807_v26  ;;  %s1753_s9 = scalar_lea.vmem %s1444_s25, 256 }
 0xca5   :  { %p1754_p0 = scmp.ne.s32.totalorder %s1444_s25, %s1753_s9  ;;  %p1759_p2 = scmp.lt.s32.totalorder %s1753_s9, %s1753_s9 }
 0xca7   :  { %p1760_p3 = por %p1759_p2, %p1758_p1 }
 0xca9   :  { %p1761_p4 = pnand %p1760_p3, %p1754_p0 }
 0xcd6   :  { %v1372_v28 = vpop.f32.mrb[44].mxu1 }
 0xcd7   :  { %v1379_v29 = vmul.f32 %v1752_v27, %v1372_v28  ;;  %v1699_v31 = vpop.f32.mrb[45].mxu1 }
 0xcd8   :  { %v1375_v32 = vpop.f32.mrb[46].mxu1 }
 0xcd9   :  { %v1380_v33 = vpack.c.bf16 %v1379_v29, %v1379_v29  ;;  %v1700_v34 = vpop.f32.mrb[47].mxu1 }
 0xcdb   :  { %1704 = vmatmul.mubr.msk.bf16.vlgmr.msra.gmra.mrb[48].mxu0 %vm39_vm2, %v1380_v33 }
 0xdae   :  { %v1422_v35 = vpop.f32.mrb[48].mxu0 }
 0xdaf   :  { %v1428_v36 = vadd.f32 %v1422_v35, %v1278_v14  ;;  %v1705_v37 = vpop.f32.mrb[49].mxu0 }
 0xdb0   :  { %v1425_v38 = vpop.f32.mrb[50].mxu0 }
 0xdb1   :  { %v1436_v39 = vadd.f32 %v2087_v51, %v1428_v36  ;;  %v1706_v40 = vpop.f32.mrb[51].mxu0 }
 0xdb3   :  { %1437 = vst.msk [vmem:[#allocation2 + $0x8] sm:$0xff] %vm90_vm1, %v1436_v39 }
 0xdb4   :  { %1764 = shalt.err (!%p1761_p4)
}
 0xdb5   :  { %s1765_s10 = scalar_lea.hbm %s2278_s7, 256 }
 0xdb6   :  { %p1766_p5 = scmp.ne.s32.totalorder %s2278_s7, %s1765_s10  ;;  %p1769_p6 = scmp.lt.u32.totalorder %s1765_s10, %s2278_s7 }
 0xdb8   :  { %p1771_p7 = pnand %p1769_p6, %p1766_p5 }
 0xdba   :  { %1774 = shalt.err (!%p1771_p7)
}
 0xdbb   :  { %s1787_s5 = smov 128   ;;  %s1788_s15 = smov 8  }
 0xdbc   :  { %1449 = dma.vmem_to_hbm [thread:$0]  %s1444_s25, 256, %s2278_s7, [#allocation3], %s1787_s5, %s1787_s5, %s1788_s15  }
 0xdbd   :  { %1775 = dma.done.wait [#allocation3], 256  }
 0xdbe   :  { %1776 = vsyncadd [#allocation3], 4294967040 }
 0xdbf   :  { %1461 = vsyncpa [#allocation3], 1 }

</bundles_post_ra>
